<compile_context>
chip_gen: v6e
topology: v6e:2x2x1
jax: 0.10.0
libtpu: 0.0.40
codegen_flags: <defaults>
</compile_context>

<pallas_src>
import functools

import jax
import jax.numpy as jnp
from jax import lax
from jax.experimental import pallas as pl
from jax.experimental.pallas import tpu as pltpu

LN_EPS = 1e-5  # torch.nn.LayerNorm default


def _layernorm_f32(z, gamma, beta):
    """LayerNorm with statistics and affine in f32 (returns f32)."""
    zf = z.astype(jnp.float32)
    mu = jnp.mean(zf, axis=-1, keepdims=True)
    var = jnp.mean((zf - mu) ** 2, axis=-1, keepdims=True)
    return (zf - mu) * lax.rsqrt(var + LN_EPS) * gamma + beta


def _gelu_exact(x):
    # torch.nn.GELU default (erf-based, not tanh approximation)
    return 0.5 * x * (1.0 + lax.erf(x * 0.7071067811865476))


# ----------------------------------------------------------------------------
# Kernel
# ----------------------------------------------------------------------------
def cross_block_kernel(
    x_ref, y_ref,
    n11_g_ref, n11_b_ref, n12_g_ref, n12_b_ref,
    wq_ref, bq_ref, wk_ref, bk_ref, wv_ref, bv_ref, wproj_ref, bproj_ref,
    n2_g_ref, n2_b_ref,
    w1_ref, b1_ref, w2_ref, b2_ref,
    o_ref,
    k_scr, v_scr,
    *, num_heads, head_dim, tq,
):
    C = num_heads * head_dim
    scale = head_dim ** (-0.5)
    dt = x_ref.dtype          # MXU operand dtype (bf16 stays bf16; acc in f32)
    f32 = jnp.float32

    qi = pl.program_id(1)
    q_start = pl.multiple_of(qi * tq, tq)

    # ---- per-batch KV cache: LayerNorm(x) + K / V projections only at qi==0 --
    @pl.when(qi == 0)
    def _():
        xn = _layernorm_f32(
            x_ref[0], n11_g_ref[0].astype(f32), n11_b_ref[0].astype(f32)
        ).astype(dt)
        k = jnp.dot(xn, wk_ref[...], preferred_element_type=f32) + bk_ref[0].astype(f32)
        v = jnp.dot(xn, wv_ref[...], preferred_element_type=f32) + bv_ref[0].astype(f32)
        k_scr[...] = k.astype(dt)
        v_scr[...] = v.astype(dt)

    # ---- per-tile Q projection (softmax scale folded into q) -----------------
    yn = _layernorm_f32(
        y_ref[0], n12_g_ref[0].astype(f32), n12_b_ref[0].astype(f32)
    ).astype(dt)
    q = jnp.dot(yn, wq_ref[...], preferred_element_type=f32) + bq_ref[0].astype(f32)
    q = (q * scale).astype(dt)                          # (TQ, C)

    # ---- per-head attention, output projection folded per head ---------------
    # Each head is one MXU matmul anyway (no batched-matmul HW); keeping only
    # one head's (TQ, N) scores live bounds VMEM, and folding Wproj[h*D:(h+1)*D]
    # into the accumulator removes the lane concat over heads entirely.
    acc = jnp.zeros((tq, C), f32)
    for h in range(num_heads):
        lo = h * head_dim
        hi = lo + head_dim
        qh = q[:, lo:hi]                                # (TQ, D)
        kh = k_scr[:, lo:hi]                            # (N,  D)
        vh = v_scr[:, lo:hi]                            # (N,  D)
        s = lax.dot_general(qh, kh, (((1,), (1,)), ((), ())),
                            preferred_element_type=f32)            # (TQ, N) f32
        s = s - jnp.max(s, axis=-1, keepdims=True)
        p = jnp.exp(s)
        p = p * pl.reciprocal(jnp.sum(p, axis=-1, keepdims=True), approx=False)
        oh = jnp.dot(p.astype(dt), vh, preferred_element_type=f32)  # (TQ, D) f32
        acc = acc + jnp.dot(oh.astype(dt), wproj_ref[lo:hi, :],
                            preferred_element_type=f32)             # (TQ, C) f32

    attn = acc + bproj_ref[0].astype(f32)

    # ---- residual 1 (x residual rows are a dynamic sub-slice of the x block) -
    x_res = x_ref[0, pl.ds(q_start, tq), :].astype(f32)
    x1 = x_res + attn

    # ---- MLP -----------------------------------------------------------------
    x2 = _layernorm_f32(x1, n2_g_ref[0].astype(f32), n2_b_ref[0].astype(f32)).astype(dt)
    h1 = jnp.dot(x2, w1_ref[...], preferred_element_type=f32) + b1_ref[0].astype(f32)
    h1 = _gelu_exact(h1).astype(dt)
    h2 = jnp.dot(h1, w2_ref[...], preferred_element_type=f32) + b2_ref[0].astype(f32)

    o_ref[0] = (x1 + h2).astype(o_ref.dtype)            # residual 2


# ----------------------------------------------------------------------------
# VMEM-aware sizing
# ----------------------------------------------------------------------------
def _vmem_physical_bytes():
    """Per-TensorCore VMEM capacity; conservative fallback if the query fails."""
    try:
        info = pltpu.get_tpu_info()
        for attr in ("vmem_capacity_bytes", "vmem_bytes", "vmem_size_bytes"):
            v = getattr(info, attr, None)
            if v:
                return int(v)
    except Exception:
        pass
    return 64 * 1024 * 1024  # v7x per-core size: a safe lower bound everywhere


def _vmem_estimate_bytes(n, c, hidden, tq, itemsize):
    """Rough per-invocation VMEM footprint for a given q-tile size."""
    f32 = 4
    weights = (4 * c * c + 2 * c * hidden + 8 * c + hidden) * itemsize  # single-buffered
    x_block = 2 * n * c * itemsize         # full kv-source rows, double-buffered
    y_block = 2 * tq * c * itemsize
    o_block = 2 * tq * c * itemsize
    kv_scratch = 2 * n * c * itemsize      # K + V caches
    scores = 2 * tq * n * f32              # one head's s + p live at a time
    mlp = tq * hidden * (f32 + itemsize)   # fc1 output + GELU in compute dtype
    acts = 8 * tq * c * f32                # q, acc, x1, x2, residual, misc
    return weights + x_block + y_block + o_block + kv_scratch + scores + mlp + acts


def _pick_tq(n, c, hidden, itemsize, budget):
    """Largest lane/sublane-friendly q-tile that divides N and fits the budget."""
    min_tile = 16 if itemsize < 4 else 8   # bf16 needs (16,128) minimum tiles
    candidates = [t for t in (1024, 512, 256, 128, 64, 32, 16, 8)
                  if t >= min_tile and n % t == 0]
    for t in candidates:
        if _vmem_estimate_bytes(n, c, hidden, t, itemsize) <= budget:
            return t
    return candidates[-1] if candidates else n   # ragged / tiny-N fallback


# ----------------------------------------------------------------------------
# Wrapper
# ----------------------------------------------------------------------------
def cross_block(x, y, params, *, num_heads, compute_dtype=None, tq=None):
    assert x.shape == y.shape
    B, N, C = x.shape
    assert C % num_heads == 0
    head_dim = C // num_heads
    hidden = params["w1"].shape[1]

    # Optional bf16 MXU path: cast activations + weights once in the wrapper
    # (accumulation stays f32 via preferred_element_type inside the kernel).
    if compute_dtype is not None:
        x = x.astype(compute_dtype)
        y = y.astype(compute_dtype)
        params = {k: v.astype(compute_dtype) for k, v in params.items()}
    dt = x.dtype
    itemsize = x.dtype.itemsize

    vmem_phys = _vmem_physical_bytes()
    vmem_limit = int(vmem_phys * 3 // 4)   # ~48 MiB on v7x, ~96 MiB on v5e/v6e
    if tq is None:
        tq = _pick_tq(N, C, hidden, itemsize, vmem_limit)
    assert N % tq == 0, "q-tile must divide the sequence length"

    single = pl.Buffered(1)   # constant-index blocks: no double buffering

    def const_spec(shape):
        nd = len(shape)
        return pl.BlockSpec(shape, lambda *_: (0,) * nd, pipeline_mode=single)

    in_specs = [
        # x: full kv-source rows; block index only changes at batch boundaries
        # so it is re-DMA'd once per batch.  Residual rows are sliced from it.
        # TODO(synk): on v7x, consider pl.Buffered(1) here (or bf16 compute_dtype)
        #             to halve the 2*N*C double-buffer footprint.
        pl.BlockSpec((1, N, C), lambda b, qi: (b, 0, 0)),
        pl.BlockSpec((1, tq, C), lambda b, qi: (b, qi, 0)),   # y: q-tile rows
        const_spec((1, C)), const_spec((1, C)),               # norm1_1 gamma/beta
        const_spec((1, C)), const_spec((1, C)),               # norm1_2 gamma/beta
        const_spec((C, C)), const_spec((1, C)),               # q weight/bias
        const_spec((C, C)), const_spec((1, C)),               # k weight/bias
        const_spec((C, C)), const_spec((1, C)),               # v weight/bias
        const_spec((C, C)), const_spec((1, C)),               # proj weight/bias
        const_spec((1, C)), const_spec((1, C)),               # norm2 gamma/beta
        const_spec((C, hidden)), const_spec((1, hidden)),     # fc1 weight/bias
        const_spec((hidden, C)), const_spec((1, C)),          # fc2 weight/bias
    ]

    args = (
        x, y,
        params["n11_g"], params["n11_b"],
        params["n12_g"], params["n12_b"],
        params["wq"], params["bq"],
        params["wk"], params["bk"],
        params["wv"], params["bv"],
        params["wproj"], params["bproj"],
        params["n2_g"], params["n2_b"],
        params["w1"], params["b1"],
        params["w2"], params["b2"],
    )

    # Advisory cost estimate so XLA schedules/overlaps around the fused block.
    flops = (2 * B * N * (4 * C * C + 2 * C * hidden)
             + 4 * B * num_heads * N * N * head_dim)
    transcendentals = B * num_heads * N * N + B * N * hidden
    bytes_accessed = (sum(int(a.size) * a.dtype.itemsize for a in args)
                      + B * N * C * itemsize)
    cost = pl.CostEstimate(flops=int(flops),
                           transcendentals=int(transcendentals),
                           bytes_accessed=int(bytes_accessed))

    kernel = functools.partial(
        cross_block_kernel, num_heads=num_heads, head_dim=head_dim, tq=tq
    )

    return pl.pallas_call(
        kernel,
        out_shape=jax.ShapeDtypeStruct((B, N, C), dt),
        grid_spec=pltpu.PrefetchScalarGridSpec(
            num_scalar_prefetch=0,
            grid=(B, N // tq),
            in_specs=in_specs,
            out_specs=pl.BlockSpec((1, tq, C), lambda b, qi: (b, qi, 0)),
            scratch_shapes=[
                pltpu.VMEM((N, C), dt),   # K cache (persists across q-tiles)
                pltpu.VMEM((N, C), dt),   # V cache (persists across q-tiles)
            ],
        ),
        compiler_params=pltpu.CompilerParams(
            # batch stays "parallel" (megacore sharding on v7x); the q-tile axis
            # must be "arbitrary" because the K/V scratch is carried across it.
            dimension_semantics=("parallel", "arbitrary"),
            vmem_limit_bytes=vmem_limit,
        ),
        cost_estimate=cost,
    )(*args)


# ----------------------------------------------------------------------------
# Pure-JAX reference (mirrors the PyTorch module in eval mode)
# ----------------------------------------------------------------------------
def _reference(x, y, params, *, num_heads):
    B, N, C = x.shape
    hd = C // num_heads
    scale = hd ** (-0.5)
    ln = lambda z, g, b: _layernorm_f32(z, g[0], b[0])

    xn = ln(x, params["n11_g"], params["n11_b"])
    yn = ln(y, params["n12_g"], params["n12_b"])
    q = yn @ params["wq"] + params["bq"][0]
    k = xn @ params["wk"] + params["bk"][0]
    v = xn @ params["wv"] + params["bv"][0]
    qh = q.reshape(B, N, num_heads, hd).transpose(0, 2, 1, 3)
    kh = k.reshape(B, N, num_heads, hd).transpose(0, 2, 1, 3)
    vh = v.reshape(B, N, num_heads, hd).transpose(0, 2, 1, 3)
    attn = jax.nn.softmax(jnp.einsum("bhnd,bhmd->bhnm", qh, kh) * scale, axis=-1)
    o = jnp.einsum("bhnm,bhmd->bhnd", attn, vh).transpose(0, 2, 1, 3).reshape(B, N, C)
    o = o @ params["wproj"] + params["bproj"][0]
    x1 = x + o
    x2 = ln(x1, params["n2_g"], params["n2_b"])
    h = _gelu_exact(x2 @ params["w1"] + params["b1"][0])
    h = h @ params["w2"] + params["b2"][0]
    return x1 + h


def _make_params(key, C, hidden):
    keys = jax.random.split(key, 12)
    return {
        "n11_g": jnp.ones((1, C), jnp.float32),
        "n11_b": jnp.zeros((1, C), jnp.float32),
        "n12_g": jnp.ones((1, C), jnp.float32),
        "n12_b": jnp.zeros((1, C), jnp.float32),
        # weights stored as (in, out) == W.T of the torch nn.Linear weight;
        # the fused torch kv Linear is pre-split into wk / wv at load time.
        "wq": 0.1 * jax.random.normal(keys[0], (C, C), jnp.float32),
        "bq": 0.01 * jax.random.normal(keys[1], (1, C), jnp.float32),
        "wk": 0.1 * jax.random.normal(keys[2], (C, C), jnp.float32),
        "bk": 0.01 * jax.random.normal(keys[3], (1, C), jnp.float32),
        "wv": 0.1 * jax.random.normal(keys[4], (C, C), jnp.float32),
        "bv": 0.01 * jax.random.normal(keys[5], (1, C), jnp.float32),
        "wproj": 0.1 * jax.random.normal(keys[6], (C, C), jnp.float32),
        "bproj": 0.01 * jax.random.normal(keys[7], (1, C), jnp.float32),
        "n2_g": jnp.ones((1, C), jnp.float32),
        "n2_b": jnp.zeros((1, C), jnp.float32),
        "w1": 0.1 * jax.random.normal(keys[8], (C, hidden), jnp.float32),
        "b1": 0.01 * jax.random.normal(keys[9], (1, hidden), jnp.float32),
        "w2": 0.1 * jax.random.normal(keys[10], (hidden, C), jnp.float32),
        "b2": 0.01 * jax.random.normal(keys[11], (1, C), jnp.float32),
    }


if __name__ == "__main__":
    num_heads = 4
    C = 32
    hidden = int(C * 4.0)

    root = jax.random.PRNGKey(0)
    pkey, xkey, ykey, xkey2, ykey2 = jax.random.split(root, 5)
    params = _make_params(pkey, C, hidden)

    # --- case 1: small shapes, auto tq (single q-tile per batch) -------------
    B, N = 2, 8
    x = jax.random.normal(xkey, (B, N, C), jnp.float32)
    y = jax.random.normal(ykey, (B, N, C), jnp.float32)
    out = jax.block_until_ready(cross_block(x, y, params, num_heads=num_heads))
    ref = _reference(x, y, params, num_heads=num_heads)
    assert out.shape == (B, N, C)
    assert jnp.allclose(out, ref, atol=2e-3, rtol=2e-3), "mismatch vs reference (case 1)"

    # --- case 2: several q-tiles per batch; exercises the per-batch K/V scratch
    #     cache being reused across the "arbitrary" q-tile grid axis -----------
    B2, N2, tq2 = 2, 32, 8
    x2 = jax.random.normal(xkey2, (B2, N2, C), jnp.float32)
    y2 = jax.random.normal(ykey2, (B2, N2, C), jnp.float32)
    out2 = jax.block_until_ready(
        cross_block(x2, y2, params, num_heads=num_heads, tq=tq2))
    ref2 = _reference(x2, y2, params, num_heads=num_heads)
    assert out2.shape == (B2, N2, C)
    assert jnp.allclose(out2, ref2, atol=2e-3, rtol=2e-3), "mismatch vs reference (case 2)"

    print("KERNEL_OK")
</pallas_src>

<mosaic_0001>
module attributes {stable_mosaic.version = 11 : i64} {
  func.func @cross_block_kernel(%arg0: i32, %arg1: i32, %arg2: memref<1x8x32xf32, #tpu.memory_space<vmem>>, %arg3: memref<1x8x32xf32, #tpu.memory_space<vmem>>, %arg4: memref<1x32xf32, #tpu.memory_space<vmem>>, %arg5: memref<1x32xf32, #tpu.memory_space<vmem>>, %arg6: memref<1x32xf32, #tpu.memory_space<vmem>>, %arg7: memref<1x32xf32, #tpu.memory_space<vmem>>, %arg8: memref<32x32xf32, #tpu.memory_space<vmem>>, %arg9: memref<1x32xf32, #tpu.memory_space<vmem>>, %arg10: memref<32x32xf32, #tpu.memory_space<vmem>>, %arg11: memref<1x32xf32, #tpu.memory_space<vmem>>, %arg12: memref<32x32xf32, #tpu.memory_space<vmem>>, %arg13: memref<1x32xf32, #tpu.memory_space<vmem>>, %arg14: memref<32x32xf32, #tpu.memory_space<vmem>>, %arg15: memref<1x32xf32, #tpu.memory_space<vmem>>, %arg16: memref<1x32xf32, #tpu.memory_space<vmem>>, %arg17: memref<1x32xf32, #tpu.memory_space<vmem>>, %arg18: memref<32x128xf32, #tpu.memory_space<vmem>>, %arg19: memref<1x128xf32, #tpu.memory_space<vmem>>, %arg20: memref<128x32xf32, #tpu.memory_space<vmem>>, %arg21: memref<1x32xf32, #tpu.memory_space<vmem>>, %arg22: memref<1x8x32xf32, #tpu.memory_space<vmem>>, %arg23: memref<8x32xf32, #tpu.memory_space<vmem>>, %arg24: memref<8x32xf32, #tpu.memory_space<vmem>>) attributes {dimension_semantics = [#tpu.dimension_semantics<parallel>, #tpu.dimension_semantics<arbitrary>], iteration_bounds = array<i64: 2, 1>, scalar_prefetch = 0 : i64, scratch_operands = 2 : i64, tpu.core_type = #tpu.core_type<tc>, window_params = [{transform_indices = @transform_0, window_bounds = array<i64: 1, 8, 32>}, {transform_indices = @transform_1, window_bounds = array<i64: 1, 8, 32>}, {pipeline_mode = #tpu.pipeline_mode<synchronous>, transform_indices = @transform_2, window_bounds = array<i64: 1, 32>}, {pipeline_mode = #tpu.pipeline_mode<synchronous>, transform_indices = @transform_3, window_bounds = array<i64: 1, 32>}, {pipeline_mode = #tpu.pipeline_mode<synchronous>, transform_indices = @transform_4, window_bounds = array<i64: 1, 32>}, {pipeline_mode = #tpu.pipeline_mode<synchronous>, transform_indices = @transform_5, window_bounds = array<i64: 1, 32>}, {pipeline_mode = #tpu.pipeline_mode<synchronous>, transform_indices = @transform_6, window_bounds = array<i64: 32, 32>}, {pipeline_mode = #tpu.pipeline_mode<synchronous>, transform_indices = @transform_7, window_bounds = array<i64: 1, 32>}, {pipeline_mode = #tpu.pipeline_mode<synchronous>, transform_indices = @transform_8, window_bounds = array<i64: 32, 32>}, {pipeline_mode = #tpu.pipeline_mode<synchronous>, transform_indices = @transform_9, window_bounds = array<i64: 1, 32>}, {pipeline_mode = #tpu.pipeline_mode<synchronous>, transform_indices = @transform_10, window_bounds = array<i64: 32, 32>}, {pipeline_mode = #tpu.pipeline_mode<synchronous>, transform_indices = @transform_11, window_bounds = array<i64: 1, 32>}, {pipeline_mode = #tpu.pipeline_mode<synchronous>, transform_indices = @transform_12, window_bounds = array<i64: 32, 32>}, {pipeline_mode = #tpu.pipeline_mode<synchronous>, transform_indices = @transform_13, window_bounds = array<i64: 1, 32>}, {pipeline_mode = #tpu.pipeline_mode<synchronous>, transform_indices = @transform_14, window_bounds = array<i64: 1, 32>}, {pipeline_mode = #tpu.pipeline_mode<synchronous>, transform_indices = @transform_15, window_bounds = array<i64: 1, 32>}, {pipeline_mode = #tpu.pipeline_mode<synchronous>, transform_indices = @transform_16, window_bounds = array<i64: 32, 128>}, {pipeline_mode = #tpu.pipeline_mode<synchronous>, transform_indices = @transform_17, window_bounds = array<i64: 1, 128>}, {pipeline_mode = #tpu.pipeline_mode<synchronous>, transform_indices = @transform_18, window_bounds = array<i64: 128, 32>}, {pipeline_mode = #tpu.pipeline_mode<synchronous>, transform_indices = @transform_19, window_bounds = array<i64: 1, 32>}, {transform_indices = @transform_20, window_bounds = array<i64: 1, 8, 32>}]} {
    %c8_i32 = arith.constant 8 : i32
    %0 = arith.muli %arg1, %c8_i32 : i32
    %1 = tpu.assume_multiple %0, 8 : i32
    %c0_i32 = arith.constant 0 : i32
    %2 = arith.cmpi eq, %arg1, %c0_i32 : i32
    %3 = arith.extui %2 : i1 to i32
    %c0_i32_0 = arith.constant 0 : i32
    %4 = arith.cmpi ne, %3, %c0_i32_0 : i32
    scf.if %4 {
      %c0_88 = arith.constant 0 : index
      %c0_89 = arith.constant 0 : index
      %c0_90 = arith.constant 0 : index
      %180 = vector.load %arg2[%c0_88, %c0_89, %c0_90] : memref<1x8x32xf32, #tpu.memory_space<vmem>>, vector<1x8x32xf32>
      %181 = vector.shape_cast %180 : vector<1x8x32xf32> to vector<8x32xf32>
      %c0_91 = arith.constant 0 : index
      %c0_92 = arith.constant 0 : index
      %182 = vector.load %arg4[%c0_91, %c0_92] : memref<1x32xf32, #tpu.memory_space<vmem>>, vector<1x32xf32>
      %183 = vector.shape_cast %182 : vector<1x32xf32> to vector<32xf32>
      %c0_93 = arith.constant 0 : index
      %c0_94 = arith.constant 0 : index
      %184 = vector.load %arg5[%c0_93, %c0_94] : memref<1x32xf32, #tpu.memory_space<vmem>>, vector<1x32xf32>
      %185 = vector.shape_cast %184 : vector<1x32xf32> to vector<32xf32>
      %cst_95 = arith.constant dense<0.000000e+00> : vector<8xf32>
      %186 = vector.multi_reduction <add>, %181, %cst_95 [1] : vector<8x32xf32> to vector<8xf32>
      %187 = vector.shape_cast %186 : vector<8xf32> to vector<8x1xf32>
      %cst_96 = arith.constant 3.200000e+01 : f32
      %188 = vector.broadcast %cst_96 : f32 to vector<8x1xf32>
      %189 = arith.divf %187, %188 : vector<8x1xf32>
      %190 = vector.broadcast %189 : vector<8x1xf32> to vector<8x32xf32>
      %191 = arith.subf %181, %190 : vector<8x32xf32>
      %192 = arith.mulf %191, %191 : vector<8x32xf32>
      %cst_97 = arith.constant dense<0.000000e+00> : vector<8xf32>
      %193 = vector.multi_reduction <add>, %192, %cst_97 [1] : vector<8x32xf32> to vector<8xf32>
      %194 = vector.shape_cast %193 : vector<8xf32> to vector<8x1xf32>
      %cst_98 = arith.constant 3.200000e+01 : f32
      %195 = vector.broadcast %cst_98 : f32 to vector<8x1xf32>
      %196 = arith.divf %194, %195 : vector<8x1xf32>
      %197 = vector.broadcast %189 : vector<8x1xf32> to vector<8x32xf32>
      %198 = arith.subf %181, %197 : vector<8x32xf32>
      %cst_99 = arith.constant 9.99999974E-6 : f32
      %199 = vector.broadcast %cst_99 : f32 to vector<8x1xf32>
      %200 = arith.addf %196, %199 : vector<8x1xf32>
      %201 = math.rsqrt %200 : vector<8x1xf32>
      %202 = vector.broadcast %201 : vector<8x1xf32> to vector<8x32xf32>
      %203 = arith.mulf %198, %202 : vector<8x32xf32>
      %204 = vector.shape_cast %183 : vector<32xf32> to vector<1x32xf32>
      %205 = vector.broadcast %204 : vector<1x32xf32> to vector<8x32xf32>
      %206 = arith.mulf %203, %205 : vector<8x32xf32>
      %207 = vector.shape_cast %185 : vector<32xf32> to vector<1x32xf32>
      %208 = vector.broadcast %207 : vector<1x32xf32> to vector<8x32xf32>
      %209 = arith.addf %206, %208 : vector<8x32xf32>
      %c0_100 = arith.constant 0 : index
      %c0_101 = arith.constant 0 : index
      %210 = vector.load %arg10[%c0_100, %c0_101] : memref<32x32xf32, #tpu.memory_space<vmem>>, vector<32x32xf32>
      %cst_102 = arith.constant dense<0.000000e+00> : vector<8x32xf32>
      %211 = tpu.matmul %209, %210, %cst_102 {dimension_numbers = #tpu.dot_dimension_numbers<[1], [0], [0], [1], [0, 0, 1, 1], [], []>} : vector<8x32xf32>, vector<32x32xf32>, vector<8x32xf32> -> vector<8x32xf32>
      %c0_103 = arith.constant 0 : index
      %c0_104 = arith.constant 0 : index
      %212 = vector.load %arg11[%c0_103, %c0_104] : memref<1x32xf32, #tpu.memory_space<vmem>>, vector<1x32xf32>
      %213 = vector.shape_cast %212 : vector<1x32xf32> to vector<32xf32>
      %214 = vector.shape_cast %213 : vector<32xf32> to vector<1x32xf32>
      %215 = vector.broadcast %214 : vector<1x32xf32> to vector<8x32xf32>
      %216 = arith.addf %211, %215 : vector<8x32xf32>
      %c0_105 = arith.constant 0 : index
      %c0_106 = arith.constant 0 : index
      %217 = vector.load %arg12[%c0_105, %c0_106] : memref<32x32xf32, #tpu.memory_space<vmem>>, vector<32x32xf32>
      %cst_107 = arith.constant dense<0.000000e+00> : vector<8x32xf32>
      %218 = tpu.matmul %209, %217, %cst_107 {dimension_numbers = #tpu.dot_dimension_numbers<[1], [0], [0], [1], [0, 0, 1, 1], [], []>} : vector<8x32xf32>, vector<32x32xf32>, vector<8x32xf32> -> vector<8x32xf32>
      %c0_108 = arith.constant 0 : index
      %c0_109 = arith.constant 0 : index
      %219 = vector.load %arg13[%c0_108, %c0_109] : memref<1x32xf32, #tpu.memory_space<vmem>>, vector<1x32xf32>
      %220 = vector.shape_cast %219 : vector<1x32xf32> to vector<32xf32>
      %221 = vector.shape_cast %220 : vector<32xf32> to vector<1x32xf32>
      %222 = vector.broadcast %221 : vector<1x32xf32> to vector<8x32xf32>
      %223 = arith.addf %218, %222 : vector<8x32xf32>
      %c0_110 = arith.constant 0 : index
      %c0_111 = arith.constant 0 : index
      %224 = vector.load %arg23[%c0_110, %c0_111] : memref<8x32xf32, #tpu.memory_space<vmem>>, vector<8x32xf32>
      tpu.vector_store %arg23[%c0_110, %c0_111], %216 {strides = array<i32>} : memref<8x32xf32, #tpu.memory_space<vmem>>, vector<8x32xf32>,
      %c0_112 = arith.constant 0 : index
      %c0_113 = arith.constant 0 : index
      %225 = vector.load %arg24[%c0_112, %c0_113] : memref<8x32xf32, #tpu.memory_space<vmem>>, vector<8x32xf32>
      tpu.vector_store %arg24[%c0_112, %c0_113], %223 {strides = array<i32>} : memref<8x32xf32, #tpu.memory_space<vmem>>, vector<8x32xf32>,
    } else {
    }
    %c0 = arith.constant 0 : index
    %c0_1 = arith.constant 0 : index
    %c0_2 = arith.constant 0 : index
    %5 = vector.load %arg3[%c0, %c0_1, %c0_2] : memref<1x8x32xf32, #tpu.memory_space<vmem>>, vector<1x8x32xf32>
    %6 = vector.shape_cast %5 : vector<1x8x32xf32> to vector<8x32xf32>
    %c0_3 = arith.constant 0 : index
    %c0_4 = arith.constant 0 : index
    %7 = vector.load %arg6[%c0_3, %c0_4] : memref<1x32xf32, #tpu.memory_space<vmem>>, vector<1x32xf32>
    %8 = vector.shape_cast %7 : vector<1x32xf32> to vector<32xf32>
    %c0_5 = arith.constant 0 : index
    %c0_6 = arith.constant 0 : index
    %9 = vector.load %arg7[%c0_5, %c0_6] : memref<1x32xf32, #tpu.memory_space<vmem>>, vector<1x32xf32>
    %10 = vector.shape_cast %9 : vector<1x32xf32> to vector<32xf32>
    %cst = arith.constant dense<0.000000e+00> : vector<8xf32>
    %11 = vector.multi_reduction <add>, %6, %cst [1] : vector<8x32xf32> to vector<8xf32>
    %12 = vector.shape_cast %11 : vector<8xf32> to vector<8x1xf32>
    %cst_7 = arith.constant 3.200000e+01 : f32
    %13 = vector.broadcast %cst_7 : f32 to vector<8x1xf32>
    %14 = arith.divf %12, %13 : vector<8x1xf32>
    %15 = vector.broadcast %14 : vector<8x1xf32> to vector<8x32xf32>
    %16 = arith.subf %6, %15 : vector<8x32xf32>
    %17 = arith.mulf %16, %16 : vector<8x32xf32>
    %cst_8 = arith.constant dense<0.000000e+00> : vector<8xf32>
    %18 = vector.multi_reduction <add>, %17, %cst_8 [1] : vector<8x32xf32> to vector<8xf32>
    %19 = vector.shape_cast %18 : vector<8xf32> to vector<8x1xf32>
    %cst_9 = arith.constant 3.200000e+01 : f32
    %20 = vector.broadcast %cst_9 : f32 to vector<8x1xf32>
    %21 = arith.divf %19, %20 : vector<8x1xf32>
    %22 = vector.broadcast %14 : vector<8x1xf32> to vector<8x32xf32>
    %23 = arith.subf %6, %22 : vector<8x32xf32>
    %cst_10 = arith.constant 9.99999974E-6 : f32
    %24 = vector.broadcast %cst_10 : f32 to vector<8x1xf32>
    %25 = arith.addf %21, %24 : vector<8x1xf32>
    %26 = math.rsqrt %25 : vector<8x1xf32>
    %27 = vector.broadcast %26 : vector<8x1xf32> to vector<8x32xf32>
    %28 = arith.mulf %23, %27 : vector<8x32xf32>
    %29 = vector.shape_cast %8 : vector<32xf32> to vector<1x32xf32>
    %30 = vector.broadcast %29 : vector<1x32xf32> to vector<8x32xf32>
    %31 = arith.mulf %28, %30 : vector<8x32xf32>
    %32 = vector.shape_cast %10 : vector<32xf32> to vector<1x32xf32>
    %33 = vector.broadcast %32 : vector<1x32xf32> to vector<8x32xf32>
    %34 = arith.addf %31, %33 : vector<8x32xf32>
    %c0_11 = arith.constant 0 : index
    %c0_12 = arith.constant 0 : index
    %35 = vector.load %arg8[%c0_11, %c0_12] : memref<32x32xf32, #tpu.memory_space<vmem>>, vector<32x32xf32>
    %cst_13 = arith.constant dense<0.000000e+00> : vector<8x32xf32>
    %36 = tpu.matmul %34, %35, %cst_13 {dimension_numbers = #tpu.dot_dimension_numbers<[1], [0], [0], [1], [0, 0, 1, 1], [], []>} : vector<8x32xf32>, vector<32x32xf32>, vector<8x32xf32> -> vector<8x32xf32>
    %c0_14 = arith.constant 0 : index
    %c0_15 = arith.constant 0 : index
    %37 = vector.load %arg9[%c0_14, %c0_15] : memref<1x32xf32, #tpu.memory_space<vmem>>, vector<1x32xf32>
    %38 = vector.shape_cast %37 : vector<1x32xf32> to vector<32xf32>
    %39 = vector.shape_cast %38 : vector<32xf32> to vector<1x32xf32>
    %40 = vector.broadcast %39 : vector<1x32xf32> to vector<8x32xf32>
    %41 = arith.addf %36, %40 : vector<8x32xf32>
    %cst_16 = arith.constant 0.353553385 : f32
    %42 = vector.broadcast %cst_16 : f32 to vector<8x32xf32>
    %43 = arith.mulf %41, %42 : vector<8x32xf32>
    %cst_17 = arith.constant 0.000000e+00 : f32
    %44 = vector.broadcast %cst_17 : f32 to vector<8x32xf32>
    %45 = vector.extract_strided_slice %43 {offsets = [0, 0], sizes = [8, 8], strides = [1, 1]} : vector<8x32xf32> to vector<8x8xf32>
    %c0_18 = arith.constant 0 : index
    %c0_19 = arith.constant 0 : index
    %46 = vector.load %arg23[%c0_18, %c0_19] : memref<8x32xf32, #tpu.memory_space<vmem>>, vector<8x8xf32>
    %c0_20 = arith.constant 0 : index
    %c0_21 = arith.constant 0 : index
    %47 = vector.load %arg24[%c0_20, %c0_21] : memref<8x32xf32, #tpu.memory_space<vmem>>, vector<8x8xf32>
    %cst_22 = arith.constant dense<0.000000e+00> : vector<8x8xf32>
    %48 = tpu.matmul %45, %46, %cst_22 {dimension_numbers = #tpu.dot_dimension_numbers<[1], [1], [0], [0], [0, 0, 1, 0], [], []>} : vector<8x8xf32>, vector<8x8xf32>, vector<8x8xf32> -> vector<8x8xf32>
    %cst_23 = arith.constant dense<0xFF800000> : vector<8xf32>
    %49 = vector.multi_reduction <maximumf>, %48, %cst_23 [1] : vector<8x8xf32> to vector<8xf32>
    %50 = vector.shape_cast %49 : vector<8xf32> to vector<8x1xf32>
    %51 = vector.broadcast %50 : vector<8x1xf32> to vector<8x8xf32>
    %52 = arith.subf %48, %51 : vector<8x8xf32>
    %53 = math.exp %52 : vector<8x8xf32>
    %cst_24 = arith.constant dense<0.000000e+00> : vector<8xf32>
    %54 = vector.multi_reduction <add>, %53, %cst_24 [1] : vector<8x8xf32> to vector<8xf32>
    %55 = vector.shape_cast %54 : vector<8xf32> to vector<8x1xf32>
    %56 = tpu.reciprocal %55 : vector<8x1xf32> -> vector<8x1xf32>
    %57 = vector.broadcast %56 : vector<8x1xf32> to vector<8x8xf32>
    %58 = arith.mulf %53, %57 : vector<8x8xf32>
    %cst_25 = arith.constant dense<0.000000e+00> : vector<8x8xf32>
    %59 = tpu.matmul %58, %47, %cst_25 {dimension_numbers = #tpu.dot_dimension_numbers<[1], [0], [0], [1], [0, 0, 1, 1], [], []>} : vector<8x8xf32>, vector<8x8xf32>, vector<8x8xf32> -> vector<8x8xf32>
    %c0_26 = arith.constant 0 : index
    %c0_27 = arith.constant 0 : index
    %60 = vector.load %arg14[%c0_26, %c0_27] : memref<32x32xf32, #tpu.memory_space<vmem>>, vector<8x32xf32>
    %cst_28 = arith.constant dense<0.000000e+00> : vector<8x32xf32>
    %61 = tpu.matmul %59, %60, %cst_28 {dimension_numbers = #tpu.dot_dimension_numbers<[1], [0], [0], [1], [0, 0, 1, 1], [], []>} : vector<8x8xf32>, vector<8x32xf32>, vector<8x32xf32> -> vector<8x32xf32>
    %62 = arith.addf %44, %61 : vector<8x32xf32>
    %63 = vector.extract_strided_slice %43 {offsets = [0, 8], sizes = [8, 8], strides = [1, 1]} : vector<8x32xf32> to vector<8x8xf32>
    %c0_29 = arith.constant 0 : index
    %c8 = arith.constant 8 : index
    %64 = vector.load %arg23[%c0_29, %c8] : memref<8x32xf32, #tpu.memory_space<vmem>>, vector<8x8xf32>
    %c0_30 = arith.constant 0 : index
    %c8_31 = arith.constant 8 : index
    %65 = vector.load %arg24[%c0_30, %c8_31] : memref<8x32xf32, #tpu.memory_space<vmem>>, vector<8x8xf32>
    %cst_32 = arith.constant dense<0.000000e+00> : vector<8x8xf32>
    %66 = tpu.matmul %63, %64, %cst_32 {dimension_numbers = #tpu.dot_dimension_numbers<[1], [1], [0], [0], [0, 0, 1, 0], [], []>} : vector<8x8xf32>, vector<8x8xf32>, vector<8x8xf32> -> vector<8x8xf32>
    %cst_33 = arith.constant dense<0xFF800000> : vector<8xf32>
    %67 = vector.multi_reduction <maximumf>, %66, %cst_33 [1] : vector<8x8xf32> to vector<8xf32>
    %68 = vector.shape_cast %67 : vector<8xf32> to vector<8x1xf32>
    %69 = vector.broadcast %68 : vector<8x1xf32> to vector<8x8xf32>
    %70 = arith.subf %66, %69 : vector<8x8xf32>
    %71 = math.exp %70 : vector<8x8xf32>
    %cst_34 = arith.constant dense<0.000000e+00> : vector<8xf32>
    %72 = vector.multi_reduction <add>, %71, %cst_34 [1] : vector<8x8xf32> to vector<8xf32>
    %73 = vector.shape_cast %72 : vector<8xf32> to vector<8x1xf32>
    %74 = tpu.reciprocal %73 : vector<8x1xf32> -> vector<8x1xf32>
    %75 = vector.broadcast %74 : vector<8x1xf32> to vector<8x8xf32>
    %76 = arith.mulf %71, %75 : vector<8x8xf32>
    %cst_35 = arith.constant dense<0.000000e+00> : vector<8x8xf32>
    %77 = tpu.matmul %76, %65, %cst_35 {dimension_numbers = #tpu.dot_dimension_numbers<[1], [0], [0], [1], [0, 0, 1, 1], [], []>} : vector<8x8xf32>, vector<8x8xf32>, vector<8x8xf32> -> vector<8x8xf32>
    %c8_36 = arith.constant 8 : index
    %c0_37 = arith.constant 0 : index
    %78 = vector.load %arg14[%c8_36, %c0_37] : memref<32x32xf32, #tpu.memory_space<vmem>>, vector<8x32xf32>
    %cst_38 = arith.constant dense<0.000000e+00> : vector<8x32xf32>
    %79 = tpu.matmul %77, %78, %cst_38 {dimension_numbers = #tpu.dot_dimension_numbers<[1], [0], [0], [1], [0, 0, 1, 1], [], []>} : vector<8x8xf32>, vector<8x32xf32>, vector<8x32xf32> -> vector<8x32xf32>
    %80 = arith.addf %62, %79 : vector<8x32xf32>
    %81 = vector.extract_strided_slice %43 {offsets = [0, 16], sizes = [8, 8], strides = [1, 1]} : vector<8x32xf32> to vector<8x8xf32>
    %c0_39 = arith.constant 0 : index
    %c16 = arith.constant 16 : index
    %82 = vector.load %arg23[%c0_39, %c16] : memref<8x32xf32, #tpu.memory_space<vmem>>, vector<8x8xf32>
    %c0_40 = arith.constant 0 : index
    %c16_41 = arith.constant 16 : index
    %83 = vector.load %arg24[%c0_40, %c16_41] : memref<8x32xf32, #tpu.memory_space<vmem>>, vector<8x8xf32>
    %cst_42 = arith.constant dense<0.000000e+00> : vector<8x8xf32>
    %84 = tpu.matmul %81, %82, %cst_42 {dimension_numbers = #tpu.dot_dimension_numbers<[1], [1], [0], [0], [0, 0, 1, 0], [], []>} : vector<8x8xf32>, vector<8x8xf32>, vector<8x8xf32> -> vector<8x8xf32>
    %cst_43 = arith.constant dense<0xFF800000> : vector<8xf32>
    %85 = vector.multi_reduction <maximumf>, %84, %cst_43 [1] : vector<8x8xf32> to vector<8xf32>
    %86 = vector.shape_cast %85 : vector<8xf32> to vector<8x1xf32>
    %87 = vector.broadcast %86 : vector<8x1xf32> to vector<8x8xf32>
    %88 = arith.subf %84, %87 : vector<8x8xf32>
    %89 = math.exp %88 : vector<8x8xf32>
    %cst_44 = arith.constant dense<0.000000e+00> : vector<8xf32>
    %90 = vector.multi_reduction <add>, %89, %cst_44 [1] : vector<8x8xf32> to vector<8xf32>
    %91 = vector.shape_cast %90 : vector<8xf32> to vector<8x1xf32>
    %92 = tpu.reciprocal %91 : vector<8x1xf32> -> vector<8x1xf32>
    %93 = vector.broadcast %92 : vector<8x1xf32> to vector<8x8xf32>
    %94 = arith.mulf %89, %93 : vector<8x8xf32>
    %cst_45 = arith.constant dense<0.000000e+00> : vector<8x8xf32>
    %95 = tpu.matmul %94, %83, %cst_45 {dimension_numbers = #tpu.dot_dimension_numbers<[1], [0], [0], [1], [0, 0, 1, 1], [], []>} : vector<8x8xf32>, vector<8x8xf32>, vector<8x8xf32> -> vector<8x8xf32>
    %c16_46 = arith.constant 16 : index
    %c0_47 = arith.constant 0 : index
    %96 = vector.load %arg14[%c16_46, %c0_47] : memref<32x32xf32, #tpu.memory_space<vmem>>, vector<8x32xf32>
    %cst_48 = arith.constant dense<0.000000e+00> : vector<8x32xf32>
    %97 = tpu.matmul %95, %96, %cst_48 {dimension_numbers = #tpu.dot_dimension_numbers<[1], [0], [0], [1], [0, 0, 1, 1], [], []>} : vector<8x8xf32>, vector<8x32xf32>, vector<8x32xf32> -> vector<8x32xf32>
    %98 = arith.addf %80, %97 : vector<8x32xf32>
    %99 = vector.extract_strided_slice %43 {offsets = [0, 24], sizes = [8, 8], strides = [1, 1]} : vector<8x32xf32> to vector<8x8xf32>
    %c0_49 = arith.constant 0 : index
    %c24 = arith.constant 24 : index
    %100 = vector.load %arg23[%c0_49, %c24] : memref<8x32xf32, #tpu.memory_space<vmem>>, vector<8x8xf32>
    %c0_50 = arith.constant 0 : index
    %c24_51 = arith.constant 24 : index
    %101 = vector.load %arg24[%c0_50, %c24_51] : memref<8x32xf32, #tpu.memory_space<vmem>>, vector<8x8xf32>
    %cst_52 = arith.constant dense<0.000000e+00> : vector<8x8xf32>
    %102 = tpu.matmul %99, %100, %cst_52 {dimension_numbers = #tpu.dot_dimension_numbers<[1], [1], [0], [0], [0, 0, 1, 0], [], []>} : vector<8x8xf32>, vector<8x8xf32>, vector<8x8xf32> -> vector<8x8xf32>
    %cst_53 = arith.constant dense<0xFF800000> : vector<8xf32>
    %103 = vector.multi_reduction <maximumf>, %102, %cst_53 [1] : vector<8x8xf32> to vector<8xf32>
    %104 = vector.shape_cast %103 : vector<8xf32> to vector<8x1xf32>
    %105 = vector.broadcast %104 : vector<8x1xf32> to vector<8x8xf32>
    %106 = arith.subf %102, %105 : vector<8x8xf32>
    %107 = math.exp %106 : vector<8x8xf32>
    %cst_54 = arith.constant dense<0.000000e+00> : vector<8xf32>
    %108 = vector.multi_reduction <add>, %107, %cst_54 [1] : vector<8x8xf32> to vector<8xf32>
    %109 = vector.shape_cast %108 : vector<8xf32> to vector<8x1xf32>
    %110 = tpu.reciprocal %109 : vector<8x1xf32> -> vector<8x1xf32>
    %111 = vector.broadcast %110 : vector<8x1xf32> to vector<8x8xf32>
    %112 = arith.mulf %107, %111 : vector<8x8xf32>
    %cst_55 = arith.constant dense<0.000000e+00> : vector<8x8xf32>
    %113 = tpu.matmul %112, %101, %cst_55 {dimension_numbers = #tpu.dot_dimension_numbers<[1], [0], [0], [1], [0, 0, 1, 1], [], []>} : vector<8x8xf32>, vector<8x8xf32>, vector<8x8xf32> -> vector<8x8xf32>
    %c24_56 = arith.constant 24 : index
    %c0_57 = arith.constant 0 : index
    %114 = vector.load %arg14[%c24_56, %c0_57] : memref<32x32xf32, #tpu.memory_space<vmem>>, vector<8x32xf32>
    %cst_58 = arith.constant dense<0.000000e+00> : vector<8x32xf32>
    %115 = tpu.matmul %113, %114, %cst_58 {dimension_numbers = #tpu.dot_dimension_numbers<[1], [0], [0], [1], [0, 0, 1, 1], [], []>} : vector<8x8xf32>, vector<8x32xf32>, vector<8x32xf32> -> vector<8x32xf32>
    %116 = arith.addf %98, %115 : vector<8x32xf32>
    %c0_59 = arith.constant 0 : index
    %c0_60 = arith.constant 0 : index
    %117 = vector.load %arg15[%c0_59, %c0_60] : memref<1x32xf32, #tpu.memory_space<vmem>>, vector<1x32xf32>
    %118 = vector.shape_cast %117 : vector<1x32xf32> to vector<32xf32>
    %119 = vector.shape_cast %118 : vector<32xf32> to vector<1x32xf32>
    %120 = vector.broadcast %119 : vector<1x32xf32> to vector<8x32xf32>
    %121 = arith.addf %116, %120 : vector<8x32xf32>
    %c0_61 = arith.constant 0 : index
    %122 = arith.index_cast %1 : i32 to index
    %c0_62 = arith.constant 0 : index
    %123 = vector.load %arg2[%c0_61, %122, %c0_62] : memref<1x8x32xf32, #tpu.memory_space<vmem>>, vector<1x8x32xf32>
    %124 = vector.shape_cast %123 : vector<1x8x32xf32> to vector<8x32xf32>
    %125 = arith.addf %124, %121 : vector<8x32xf32>
    %c0_63 = arith.constant 0 : index
    %c0_64 = arith.constant 0 : index
    %126 = vector.load %arg16[%c0_63, %c0_64] : memref<1x32xf32, #tpu.memory_space<vmem>>, vector<1x32xf32>
    %127 = vector.shape_cast %126 : vector<1x32xf32> to vector<32xf32>
    %c0_65 = arith.constant 0 : index
    %c0_66 = arith.constant 0 : index
    %128 = vector.load %arg17[%c0_65, %c0_66] : memref<1x32xf32, #tpu.memory_space<vmem>>, vector<1x32xf32>
    %129 = vector.shape_cast %128 : vector<1x32xf32> to vector<32xf32>
    %cst_67 = arith.constant dense<0.000000e+00> : vector<8xf32>
    %130 = vector.multi_reduction <add>, %125, %cst_67 [1] : vector<8x32xf32> to vector<8xf32>
    %131 = vector.shape_cast %130 : vector<8xf32> to vector<8x1xf32>
    %cst_68 = arith.constant 3.200000e+01 : f32
    %132 = vector.broadcast %cst_68 : f32 to vector<8x1xf32>
    %133 = arith.divf %131, %132 : vector<8x1xf32>
    %134 = vector.broadcast %133 : vector<8x1xf32> to vector<8x32xf32>
    %135 = arith.subf %125, %134 : vector<8x32xf32>
    %136 = arith.mulf %135, %135 : vector<8x32xf32>
    %cst_69 = arith.constant dense<0.000000e+00> : vector<8xf32>
    %137 = vector.multi_reduction <add>, %136, %cst_69 [1] : vector<8x32xf32> to vector<8xf32>
    %138 = vector.shape_cast %137 : vector<8xf32> to vector<8x1xf32>
    %cst_70 = arith.constant 3.200000e+01 : f32
    %139 = vector.broadcast %cst_70 : f32 to vector<8x1xf32>
    %140 = arith.divf %138, %139 : vector<8x1xf32>
    %141 = vector.broadcast %133 : vector<8x1xf32> to vector<8x32xf32>
    %142 = arith.subf %125, %141 : vector<8x32xf32>
    %cst_71 = arith.constant 9.99999974E-6 : f32
    %143 = vector.broadcast %cst_71 : f32 to vector<8x1xf32>
    %144 = arith.addf %140, %143 : vector<8x1xf32>
    %145 = math.rsqrt %144 : vector<8x1xf32>
    %146 = vector.broadcast %145 : vector<8x1xf32> to vector<8x32xf32>
    %147 = arith.mulf %142, %146 : vector<8x32xf32>
    %148 = vector.shape_cast %127 : vector<32xf32> to vector<1x32xf32>
    %149 = vector.broadcast %148 : vector<1x32xf32> to vector<8x32xf32>
    %150 = arith.mulf %147, %149 : vector<8x32xf32>
    %151 = vector.shape_cast %129 : vector<32xf32> to vector<1x32xf32>
    %152 = vector.broadcast %151 : vector<1x32xf32> to vector<8x32xf32>
    %153 = arith.addf %150, %152 : vector<8x32xf32>
    %c0_72 = arith.constant 0 : index
    %c0_73 = arith.constant 0 : index
    %154 = vector.load %arg18[%c0_72, %c0_73] : memref<32x128xf32, #tpu.memory_space<vmem>>, vector<32x128xf32>
    %cst_74 = arith.constant dense<0.000000e+00> : vector<8x128xf32>
    %155 = tpu.matmul %153, %154, %cst_74 {dimension_numbers = #tpu.dot_dimension_numbers<[1], [0], [0], [1], [0, 0, 1, 1], [], []>} : vector<8x32xf32>, vector<32x128xf32>, vector<8x128xf32> -> vector<8x128xf32>
    %c0_75 = arith.constant 0 : index
    %c0_76 = arith.constant 0 : index
    %156 = vector.load %arg19[%c0_75, %c0_76] : memref<1x128xf32, #tpu.memory_space<vmem>>, vector<1x128xf32>
    %157 = vector.shape_cast %156 : vector<1x128xf32> to vector<128xf32>
    %158 = vector.shape_cast %157 : vector<128xf32> to vector<1x128xf32>
    %159 = vector.broadcast %158 : vector<1x128xf32> to vector<8x128xf32>
    %160 = arith.addf %155, %159 : vector<8x128xf32>
    %cst_77 = arith.constant 5.000000e-01 : f32
    %161 = vector.broadcast %cst_77 : f32 to vector<8x128xf32>
    %162 = arith.mulf %161, %160 : vector<8x128xf32>
    %cst_78 = arith.constant 0.707106769 : f32
    %163 = vector.broadcast %cst_78 : f32 to vector<8x128xf32>
    %164 = arith.mulf %160, %163 : vector<8x128xf32>
    %165 = math.erf %164 : vector<8x128xf32>
    %cst_79 = arith.constant 1.000000e+00 : f32
    %166 = vector.broadcast %cst_79 : f32 to vector<8x128xf32>
    %167 = arith.addf %166, %165 : vector<8x128xf32>
    %168 = arith.mulf %162, %167 : vector<8x128xf32>
    %c0_80 = arith.constant 0 : index
    %c0_81 = arith.constant 0 : index
    %169 = vector.load %arg20[%c0_80, %c0_81] : memref<128x32xf32, #tpu.memory_space<vmem>>, vector<128x32xf32>
    %cst_82 = arith.constant dense<0.000000e+00> : vector<8x32xf32>
    %170 = tpu.matmul %168, %169, %cst_82 {dimension_numbers = #tpu.dot_dimension_numbers<[1], [0], [0], [1], [0, 0, 1, 1], [], []>} : vector<8x128xf32>, vector<128x32xf32>, vector<8x32xf32> -> vector<8x32xf32>
    %c0_83 = arith.constant 0 : index
    %c0_84 = arith.constant 0 : index
    %171 = vector.load %arg21[%c0_83, %c0_84] : memref<1x32xf32, #tpu.memory_space<vmem>>, vector<1x32xf32>
    %172 = vector.shape_cast %171 : vector<1x32xf32> to vector<32xf32>
    %173 = vector.shape_cast %172 : vector<32xf32> to vector<1x32xf32>
    %174 = vector.broadcast %173 : vector<1x32xf32> to vector<8x32xf32>
    %175 = arith.addf %170, %174 : vector<8x32xf32>
    %176 = arith.addf %125, %175 : vector<8x32xf32>
    %c0_85 = arith.constant 0 : index
    %c0_86 = arith.constant 0 : index
    %c0_87 = arith.constant 0 : index
    %177 = vector.load %arg22[%c0_85, %c0_86, %c0_87] : memref<1x8x32xf32, #tpu.memory_space<vmem>>, vector<1x8x32xf32>
    %178 = vector.shape_cast %177 : vector<1x8x32xf32> to vector<8x32xf32>
    %179 = vector.shape_cast %176 : vector<8x32xf32> to vector<1x8x32xf32>
    tpu.vector_store %arg22[%c0_85, %c0_86, %c0_87], %179 {strides = array<i32>} : memref<1x8x32xf32, #tpu.memory_space<vmem>>, vector<1x8x32xf32>,
    return
  }
  func.func @transform_0(%arg0: i32, %arg1: i32) -> (i32, i32, i32) {
    %c0_i32 = arith.constant 0 : i32
    %c0_i32_0 = arith.constant 0 : i32
    %c0_i32_1 = arith.constant 0 : i32
    return %arg0, %c0_i32, %c0_i32_0 : i32, i32, i32
  }
  func.func @transform_1(%arg0: i32, %arg1: i32) -> (i32, i32, i32) {
    %c0_i32 = arith.constant 0 : i32
    %c0_i32_0 = arith.constant 0 : i32
    return %arg0, %arg1, %c0_i32 : i32, i32, i32
  }
  func.func @transform_2(%arg0: i32, %arg1: i32) -> (i32, i32) {
    %c0_i32 = arith.constant 0 : i32
    %c0_i32_0 = arith.constant 0 : i32
    %c0_i32_1 = arith.constant 0 : i32
    return %c0_i32, %c0_i32_0 : i32, i32
  }
  func.func @transform_3(%arg0: i32, %arg1: i32) -> (i32, i32) {
    %c0_i32 = arith.constant 0 : i32
    %c0_i32_0 = arith.constant 0 : i32
    %c0_i32_1 = arith.constant 0 : i32
    return %c0_i32, %c0_i32_0 : i32, i32
  }
  func.func @transform_4(%arg0: i32, %arg1: i32) -> (i32, i32) {
    %c0_i32 = arith.constant 0 : i32
    %c0_i32_0 = arith.constant 0 : i32
    %c0_i32_1 = arith.constant 0 : i32
    return %c0_i32, %c0_i32_0 : i32, i32
  }
  func.func @transform_5(%arg0: i32, %arg1: i32) -> (i32, i32) {
    %c0_i32 = arith.constant 0 : i32
    %c0_i32_0 = arith.constant 0 : i32
    %c0_i32_1 = arith.constant 0 : i32
    return %c0_i32, %c0_i32_0 : i32, i32
  }
  func.func @transform_6(%arg0: i32, %arg1: i32) -> (i32, i32) {
    %c0_i32 = arith.constant 0 : i32
    %c0_i32_0 = arith.constant 0 : i32
    %c0_i32_1 = arith.constant 0 : i32
    return %c0_i32, %c0_i32_0 : i32, i32
  }
  func.func @transform_7(%arg0: i32, %arg1: i32) -> (i32, i32) {
    %c0_i32 = arith.constant 0 : i32
    %c0_i32_0 = arith.constant 0 : i32
    %c0_i32_1 = arith.constant 0 : i32
    return %c0_i32, %c0_i32_0 : i32, i32
  }
  func.func @transform_8(%arg0: i32, %arg1: i32) -> (i32, i32) {
    %c0_i32 = arith.constant 0 : i32
    %c0_i32_0 = arith.constant 0 : i32
    %c0_i32_1 = arith.constant 0 : i32
    return %c0_i32, %c0_i32_0 : i32, i32
  }
  func.func @transform_9(%arg0: i32, %arg1: i32) -> (i32, i32) {
    %c0_i32 = arith.constant 0 : i32
    %c0_i32_0 = arith.constant 0 : i32
    %c0_i32_1 = arith.constant 0 : i32
    return %c0_i32, %c0_i32_0 : i32, i32
  }
  func.func @transform_10(%arg0: i32, %arg1: i32) -> (i32, i32) {
    %c0_i32 = arith.constant 0 : i32
    %c0_i32_0 = arith.constant 0 : i32
    %c0_i32_1 = arith.constant 0 : i32
    return %c0_i32, %c0_i32_0 : i32, i32
  }
  func.func @transform_11(%arg0: i32, %arg1: i32) -> (i32, i32) {
    %c0_i32 = arith.constant 0 : i32
    %c0_i32_0 = arith.constant 0 : i32
    %c0_i32_1 = arith.constant 0 : i32
    return %c0_i32, %c0_i32_0 : i32, i32
  }
  func.func @transform_12(%arg0: i32, %arg1: i32) -> (i32, i32) {
    %c0_i32 = arith.constant 0 : i32
    %c0_i32_0 = arith.constant 0 : i32
    %c0_i32_1 = arith.constant 0 : i32
    return %c0_i32, %c0_i32_0 : i32, i32
  }
  func.func @transform_13(%arg0: i32, %arg1: i32) -> (i32, i32) {
    %c0_i32 = arith.constant 0 : i32
    %c0_i32_0 = arith.constant 0 : i32
    %c0_i32_1 = arith.constant 0 : i32
    return %c0_i32, %c0_i32_0 : i32, i32
  }
  func.func @transform_14(%arg0: i32, %arg1: i32) -> (i32, i32) {
    %c0_i32 = arith.constant 0 : i32
    %c0_i32_0 = arith.constant 0 : i32
    %c0_i32_1 = arith.constant 0 : i32
    return %c0_i32, %c0_i32_0 : i32, i32
  }
  func.func @transform_15(%arg0: i32, %arg1: i32) -> (i32, i32) {
    %c0_i32 = arith.constant 0 : i32
    %c0_i32_0 = arith.constant 0 : i32
    %c0_i32_1 = arith.constant 0 : i32
    return %c0_i32, %c0_i32_0 : i32, i32
  }
  func.func @transform_16(%arg0: i32, %arg1: i32) -> (i32, i32) {
    %c0_i32 = arith.constant 0 : i32
    %c0_i32_0 = arith.constant 0 : i32
    %c0_i32_1 = arith.constant 0 : i32
    return %c0_i32, %c0_i32_0 : i32, i32
  }
  func.func @transform_17(%arg0: i32, %arg1: i32) -> (i32, i32) {
    %c0_i32 = arith.constant 0 : i32
    %c0_i32_0 = arith.constant 0 : i32
    %c0_i32_1 = arith.constant 0 : i32
    return %c0_i32, %c0_i32_0 : i32, i32
  }
  func.func @transform_18(%arg0: i32, %arg1: i32) -> (i32, i32) {
    %c0_i32 = arith.constant 0 : i32
    %c0_i32_0 = arith.constant 0 : i32
    %c0_i32_1 = arith.constant 0 : i32
    return %c0_i32, %c0_i32_0 : i32, i32
  }
  func.func @transform_19(%arg0: i32, %arg1: i32) -> (i32, i32) {
    %c0_i32 = arith.constant 0 : i32
    %c0_i32_0 = arith.constant 0 : i32
    %c0_i32_1 = arith.constant 0 : i32
    return %c0_i32, %c0_i32_0 : i32, i32
  }
  func.func @transform_20(%arg0: i32, %arg1: i32) -> (i32, i32, i32) {
    %c0_i32 = arith.constant 0 : i32
    %c0_i32_0 = arith.constant 0 : i32
    return %arg0, %arg1, %c0_i32 : i32, i32, i32
  }
}

</mosaic_0001>

<bundles_post_ra>
// kernel: tpu_custom_call.1
= control target key start
LH: loop header
LB: loop body
LE: loop exit
PB: predicated region body
PF: predicated region fallthrough
CT: control target
= control target key end

     0   :  { %s4242_s0 = inlined_call_operand.hbm [shape: f32[2,8,32], index: 0, kind: input, shape index: {}]   ;;  %s4243_s1 = inlined_call_operand.hbm [shape: f32[2,8,32], index: 1, kind: input, shape index: {}]   ;;  %s4244_s2 = inlined_call_operand.hbm [shape: f32[1,32], index: 2, kind: input, shape index: {}]   ;;  %s4245_s3 = inlined_call_operand.hbm [shape: f32[1,32], index: 3, kind: input, shape index: {}]   ;;  %s4246_s4 = inlined_call_operand.hbm [shape: f32[1,32], index: 4, kind: input, shape index: {}]   ;;  %s4247_s5 = inlined_call_operand.hbm [shape: f32[1,32], index: 5, kind: input, shape index: {}]   ;;  %s4248_s6 = inlined_call_operand.vmem [shape: f32[32,32], index: 6, kind: input, shape index: {}]   ;;  %s4249_s7 = inlined_call_operand.hbm [shape: f32[1,32], index: 7, kind: input, shape index: {}]   ;;  %s4250_s8 = inlined_call_operand.vmem [shape: f32[32,32], index: 8, kind: input, shape index: {}]   ;;  %s4251_s9 = inlined_call_operand.hbm [shape: f32[1,32], index: 9, kind: input, shape index: {}]   ;;  %s4252_s10 = inlined_call_operand.vmem [shape: f32[32,32], index: 10, kind: input, shape index: {}]   ;;  %s4253_s11 = inlined_call_operand.hbm [shape: f32[1,32], index: 11, kind: input, shape index: {}]   ;;  %s4254_s12 = inlined_call_operand.vmem [shape: f32[32,32], index: 12, kind: input, shape index: {}]   ;;  %s4255_s13 = inlined_call_operand.hbm [shape: f32[1,32], index: 13, kind: input, shape index: {}]   ;;  %s4256_s14 = inlined_call_operand.hbm [shape: f32[1,32], index: 14, kind: input, shape index: {}]   ;;  %s4257_s15 = inlined_call_operand.hbm [shape: f32[1,32], index: 15, kind: input, shape index: {}]   ;;  %s4258_s16 = inlined_call_operand.vmem [shape: f32[32,128], index: 16, kind: input, shape index: {}]   ;;  %s4259_s17 = inlined_call_operand.hbm [shape: f32[1,128], index: 17, kind: input, shape index: {}]   ;;  %s4260_s18 = inlined_call_operand.vmem [shape: f32[128,32], index: 18, kind: input, shape index: {}]   ;;  %s4261_s19 = inlined_call_operand.hbm [shape: f32[1,32], index: 19, kind: input, shape index: {}]   ;;  %s4262_s20 = inlined_call_operand.hbm [shape: f32[2,8,32], index: 20, kind: output, shape index: {}]  }
   0x1   :  { %4270 = sst [smem:[#allocation39_spill]] %s4242_s0 }
   0x2   :  { %4271 = sst [smem:[#allocation40_spill]] %s4243_s1 }
   0x3   :  { %4272 = sst [smem:[#allocation41_spill]] %s4244_s2 }
   0x4   :  { %4273 = sst [smem:[#allocation42_spill]] %s4245_s3 }
   0x5   :  { %4274 = sst [smem:[#allocation43_spill]] %s4246_s4 }
   0x6   :  { %4275 = sst [smem:[#allocation44_spill]] %s4247_s5 }
   0x7   :  { %4276 = sst [smem:[#allocation45_spill]] %s4248_s6 }
   0x8   :  { %4277 = sst [smem:[#allocation46_spill]] %s4249_s7 }
   0x9   :  { %4278 = sst [smem:[#allocation47_spill]] %s4251_s9 }
   0xa   :  { %4279 = sst [smem:[#allocation48_spill]] %s4253_s11 }
   0xb   :  { %4280 = sst [smem:[#allocation49_spill]] %s4254_s12 }
   0xc   :  { %4281 = sst [smem:[#allocation50_spill]] %s4255_s13 }
   0xd   :  { %4282 = sst [smem:[#allocation51_spill]] %s4256_s14 }
   0xe   :  { %4283 = sst [smem:[#allocation52_spill]] %s4257_s15 }
   0xf   :  { %4284 = sst [smem:[#allocation53_spill]] %s4258_s16 }
  0x10   :  { %4285 = sst [smem:[#allocation54_spill]] %s4259_s17 }
  0x11   :  { %4286 = sst [smem:[#allocation55_spill]] %s4260_s18 }
  0x12   :  { %4287 = sst [smem:[#allocation56_spill]] %s4262_s20 }
  0x13   :  { %25 = vsyncpa [#allocation5], 0 }
  0x14   :  { %27 = vsyncpa [#allocation5 + $0x1], 0 }
  0x15   :  { %28 = vsyncpa [#allocation8], 0 }
  0x16   :  { %30 = vsyncpa [#allocation8 + $0x1], 0 }
  0x17   :  { %31 = vsyncpa [#allocation11], 0 }
  0x18   :  { %32 = vsyncpa [#allocation14], 0 }
  0x19   :  { %33 = vsyncpa [#allocation17], 0 }
  0x1a   :  { %34 = vsyncpa [#allocation20], 0 }
  0x1b   :  { %35 = vsyncpa [#allocation23], 0 }
  0x1c   :  { %36 = vsyncpa [#allocation26], 0 }
  0x1d   :  { %37 = vsyncpa [#allocation6], 0 }
  0x1e   :  { %39 = vsyncpa [#allocation6 + $0x1], 0  ;;  %s3681_s1 = smov 0   ;;  %s3683_s22 = smov 0  }
  0x1f   :  { %s3685_s23 = smov 0   ;;  %s3687_s24 = smov 0  }
  0x20   :  { %s3689_s2 = smov 0   ;;  %s3691_s25 = smov 0  }
  0x21 LB: > { %4288 = sst [smem:[#allocation38_spill]] %s3546_s24  ;;  %s3712_s3 = sadd.s32 4294967295, %s3554_s25   ;;  %s3554_s25 = sphi %s3691_s25, %s45_s25   ;;  %s3550_s2 = sphi %s3689_s2, %s4337_s2   ;;  %s3546_s24 = sphi %s3687_s24, %s4336_s24   ;;  %s3542_s23 = sphi %s3685_s23, %s4335_s23   ;;  %s3538_s22 = sphi %s3683_s22, %s4334_s22   ;;  %s3534_s1 = sphi %s3681_s1, %s4333_s1  }
  0x22   : > { %p2587_p0 = scmp.ge.s32.totalorder %s3554_s25, 1  ;;  %p4267_p1 = scmp.eq.s32.totalorder %s3712_s3, 0 }
  0x23   : > { %p522_p2 = scmp.lt.s32.totalorder %s3554_s25, 3  ;;  %s3556_s27 = smov [#allocation9]  }
  0x24   : > { %s535_s28 = sshll.u32 %s3556_s27, 4  ;;  %s3557_s4 = smov [#allocation10]   ;;  %s536_s28 = int_to_ptr.vmem [resolvable:$true] %s535_s28 }
  0x25   : > { %p3717_p3 = pnand %p2587_p0, %p522_p2  ;;  %s546_s29 = sshll.u32 %s3557_s4, 4  ;;  %s547_s29 = int_to_ptr.vmem [resolvable:$true] %s546_s29 }
  0x26   : > { %s3558_s0 = smov [#allocation13]   ;;  %s3085_s20 = scalar_lea.vmem %s536_s28, 16 }
  0x27   : > { %s4289_s26 = scalar_select %p3717_p3, 1, 0 }
  0x28   : > { %p2911_p5 = pneg %p3717_p3  ;;  %s568_s21 = sshll.u32 %s3558_s0, 4  ;;  %s3730_s21 = int_to_ptr.vmem [resolvable:$true] %s568_s21 }
  0x29   : > { %p3086_p8 = scmp.ne.s32.totalorder %s536_s28, %s3085_s20  ;;  %s3092_s4 = scalar_lea.vmem %s536_s28, 32 }
  0x2a   : > { %p3726_p6 = pnand %p2911_p5, %p4267_p1  ;;  %p3093_p11 = scmp.lt.s32.totalorder %s536_s28, %s536_s28 }
  0x2b   : > { %p3094_p12 = scmp.lt.s32.totalorder %s3092_s4, %s3085_s20 }
  0x2c   : > { %p3734_p7 = pneg %p3726_p6 }
  0x2d   : > { %p3095_p13 = por %p3094_p12, %p3093_p11 }
  0x2e   : > { %p3088_p9 = pnand %p3086_p8, %p3734_p7 }
  0x30   : > { %p3089_p10 = pneg %p3088_p9 }
  0x32   : > { %p3096_p0 = pnand %p3095_p13, %p3089_p10 }
  0x34   : > { %3099 = shalt.err (!%p3096_p0)
}
  0x35   : > { %s4292_s18 = sld [smem:[#allocation41_spill]]  ;;  %s3111_s16 = scalar_lea.vmem %s547_s29, 16 }
  0x36   : > { %p3112_p2 = scmp.ne.s32.totalorder %s547_s29, %s3111_s16  ;;  %s3118_s12 = scalar_lea.vmem %s547_s29, 32 }
  0x37   : > { %p3119_p8 = scmp.lt.s32.totalorder %s547_s29, %s547_s29  ;;  %p3120_p9 = scmp.lt.s32.totalorder %s3118_s12, %s3111_s16 }
  0x38   : > { %p3114_p5 = pnand %p3112_p2, %p3734_p7 }
  0x39   : > { %p3121_p1 = por %p3120_p9, %p3119_p8 }
  0x3a   : > { %p3115_p4 = pneg %p3114_p5 }
  0x3b   : > { %2914 = dma.hbm_to_vmem [thread:$0]  (!%p3726_p6), %s4292_s18, 16, %s536_s28, [#allocation8]  }
  0x3c   : > { %p3122_p3 = pnand %p3121_p1, %p3115_p4 }
  0x3e   : > { %3125 = shalt.err (!%p3122_p3)
}
  0x3f   : > { %s4293_s6 = sld [smem:[#allocation42_spill]]  ;;  %s3137_s18 = scalar_lea.vmem %s3730_s21, 16 }
  0x40   : > { %p3138_p10 = scmp.ne.s32.totalorder %s3730_s21, %s3137_s18  ;;  %s3144_s12 = scalar_lea.vmem %s3730_s21, 32 }
  0x41   : > { %p3145_p1 = scmp.lt.s32.totalorder %s3730_s21, %s3730_s21  ;;  %p3146_p3 = scmp.lt.s32.totalorder %s3144_s12, %s3137_s18 }
  0x42   : > { %p3140_p11 = pnand %p3138_p10, %p3734_p7 }
  0x43   : > { %p3147_p4 = por %p3146_p3, %p3145_p1 }
  0x44   : > { %p3141_p12 = pneg %p3140_p11 }
  0x45   : > { %2917 = dma.hbm_to_vmem [thread:$0]  (!%p3726_p6), %s4293_s6, 16, %s547_s29, [#allocation11]  }
  0x46   : > { %p3148_p13 = pnand %p3147_p4, %p3141_p12 }
  0x48   : > { %3151 = shalt.err (!%p3148_p13)
}
  0x49   : > { %s4294_s5 = sld [smem:[#allocation44_spill]]  ;;  %s3559_s6 = smov [#allocation16]  }
  0x4a   : > { %s596_s28 = sshll.u32 %s3559_s6, 4  ;;  %s3560_s29 = smov [#allocation19]   ;;  %s597_s28 = int_to_ptr.vmem [resolvable:$true] %s596_s28 }
  0x4b   : > { %s624_s0 = sshll.u32 %s3560_s29, 4  ;;  %s3163_s20 = scalar_lea.vmem %s597_s28, 16  ;;  %s625_s0 = int_to_ptr.vmem [resolvable:$true] %s624_s0 }
  0x4c   : > { %p3164_p0 = scmp.ne.s32.totalorder %s597_s28, %s3163_s20  ;;  %s3170_s4 = scalar_lea.vmem %s597_s28, 32 }
  0x4d   : > { %p3171_p8 = scmp.lt.s32.totalorder %s597_s28, %s597_s28  ;;  %p3172_p9 = scmp.lt.s32.totalorder %s3170_s4, %s3163_s20 }
  0x4e   : > { %p3166_p2 = pnand %p3164_p0, %p3734_p7 }
  0x4f   : > { %2923 = dma.hbm_to_vmem [thread:$0]  (!%p3726_p6), %s4294_s5, 16, %s3730_s21, [#allocation14]  }
  0x50   : > { %p3167_p5 = pneg %p3166_p2  ;;  %p3173_p10 = por %p3172_p9, %p3171_p8 }
  0x52   : > { %p3174_p11 = pnand %p3173_p10, %p3167_p5 }
  0x54   : > { %3177 = shalt.err (!%p3174_p11)
}
  0x55   : > { %s4295_s9 = sld [smem:[#allocation47_spill]]  ;;  %s3189_s12 = scalar_lea.vmem %s625_s0, 16 }
  0x56   : > { %p3190_p12 = scmp.ne.s32.totalorder %s625_s0, %s3189_s12  ;;  %s3196_s16 = scalar_lea.vmem %s625_s0, 32 }
  0x57   : > { %p3197_p4 = scmp.lt.s32.totalorder %s625_s0, %s625_s0  ;;  %p3198_p13 = scmp.lt.s32.totalorder %s3196_s16, %s3189_s12 }
  0x58   : > { %p3192_p1 = pnand %p3190_p12, %p3734_p7 }
  0x59   : > { %p3199_p0 = por %p3198_p13, %p3197_p4 }
  0x5a   : > { %p3193_p3 = pneg %p3192_p1 }
  0x5b   : > { %2929 = dma.hbm_to_vmem [thread:$0]  (!%p3726_p6), %s4295_s9, 16, %s597_s28, [#allocation17]  }
  0x5c   : > { %p3200_p2 = pnand %p3199_p0, %p3193_p3 }
  0x5e   : > { %3203 = shalt.err (!%p3200_p2)
}
  0x5f   : > { %s4296_s13 = sld [smem:[#allocation50_spill]]  ;;  %s3561_s28 = smov [#allocation22]  }
  0x60   : > { %s646_s29 = sshll.u32 %s3561_s28, 4  ;;  %s3562_s20 = smov [#allocation12]   ;;  %s647_s29 = int_to_ptr.vmem [resolvable:$true] %s646_s29 }
  0x61   : > { %s557_s4 = sshll.u32 %s3562_s20, 4  ;;  %s3215_s18 = scalar_lea.vmem %s647_s29, 16  ;;  %s558_s4 = int_to_ptr.vmem [resolvable:$true] %s557_s4 }
  0x62   : > { %p3216_p5 = scmp.ne.s32.totalorder %s647_s29, %s3215_s18  ;;  %s3222_s21 = scalar_lea.vmem %s647_s29, 32 }
  0x63   : > { %p3223_p10 = scmp.lt.s32.totalorder %s647_s29, %s647_s29  ;;  %p3224_p11 = scmp.lt.s32.totalorder %s3222_s21, %s3215_s18 }
  0x64   : > { %p3218_p8 = pnand %p3216_p5, %p3734_p7 }
  0x65   : > { %2935 = dma.hbm_to_vmem [thread:$0]  (!%p3726_p6), %s4296_s13, 16, %s625_s0, [#allocation20]  }
  0x66   : > { %p3219_p9 = pneg %p3218_p8  ;;  %p3225_p12 = por %p3224_p11, %p3223_p10 }
  0x68   : > { %p3226_p1 = pnand %p3225_p12, %p3219_p9 }
  0x6a   : > { %3229 = shalt.err (!%p3226_p1)
}
  0x6b   : > { %s4297_s15 = sld [smem:[#allocation52_spill]]  ;;  %s3241_s16 = scalar_lea.vmem %s558_s4, 16 }
  0x6c   : > { %p3242_p3 = scmp.ne.s32.totalorder %s558_s4, %s3241_s16  ;;  %s3248_s24 = scalar_lea.vmem %s558_s4, 32 }
  0x6d   : > { %p3249_p0 = scmp.lt.s32.totalorder %s558_s4, %s558_s4  ;;  %p3250_p2 = scmp.lt.s32.totalorder %s3248_s24, %s3241_s16 }
  0x6e   : > { %p3244_p4 = pnand %p3242_p3, %p3734_p7 }
  0x6f   : > { %p3251_p5 = por %p3250_p2, %p3249_p0 }
  0x70   : > { %p3245_p13 = pneg %p3244_p4 }
  0x71   : > { %2941 = dma.hbm_to_vmem [thread:$0]  (!%p3726_p6), %s4297_s15, 16, %s647_s29, [#allocation23]  }
  0x72   : > { %p3252_p8 = pnand %p3251_p5, %p3245_p13 }
  0x74   : > { %3255 = shalt.err (!%p3252_p8)
}
  0x75   : > { %s4298_s20 = sld [smem:[#allocation43_spill]]  ;;  %s3563_s29 = smov [#allocation15]  }
  0x76   : > { %s582_s18 = sshll.u32 %s3563_s29, 4  ;;  %s3564_s21 = smov [#allocation18]   ;;  %s583_s18 = int_to_ptr.vmem [resolvable:$true] %s582_s18 }
  0x77   : > { %s610_s12 = sshll.u32 %s3564_s21, 4  ;;  %s3267_s0 = scalar_lea.vmem %s583_s18, 16  ;;  %s611_s12 = int_to_ptr.vmem [resolvable:$true] %s610_s12 }
  0x78   : > { %p3268_p9 = scmp.ne.s32.totalorder %s583_s18, %s3267_s0  ;;  %s3274_s16 = scalar_lea.vmem %s583_s18, 32 }
  0x79   : > { %p3275_p12 = scmp.lt.s32.totalorder %s583_s18, %s583_s18  ;;  %p3276_p1 = scmp.lt.s32.totalorder %s3274_s16, %s3267_s0 }
  0x7a   : > { %p3270_p10 = pnand %p3268_p9, %p3734_p7 }
  0x7b   : > { %2920 = dma.hbm_to_vmem [thread:$0]  (!%p3726_p6), %s4298_s20, 16, %s558_s4, [#allocation11]  }
  0x7c   : > { %p3271_p11 = pneg %p3270_p10  ;;  %p3277_p3 = por %p3276_p1, %p3275_p12 }
  0x7e   : > { %p3278_p4 = pnand %p3277_p3, %p3271_p11 }
  0x80   : > { %3281 = shalt.err (!%p3278_p4)
}
  0x81   : > { %s4299_s7 = sld [smem:[#allocation46_spill]]  ;;  %s3293_s6 = scalar_lea.vmem %s611_s12, 16 }
  0x82   : > { %p3294_p13 = scmp.ne.s32.totalorder %s611_s12, %s3293_s6  ;;  %s3300_s28 = scalar_lea.vmem %s611_s12, 32 }
  0x83   : > { %p3301_p5 = scmp.lt.s32.totalorder %s611_s12, %s611_s12  ;;  %p3302_p8 = scmp.lt.s32.totalorder %s3300_s28, %s3293_s6 }
  0x84   : > { %p3296_p0 = pnand %p3294_p13, %p3734_p7 }
  0x85   : > { %p3303_p9 = por %p3302_p8, %p3301_p5 }
  0x86   : > { %p3297_p2 = pneg %p3296_p0 }
  0x87   : > { %2926 = dma.hbm_to_vmem [thread:$0]  (!%p3726_p6), %s4299_s7, 16, %s583_s18, [#allocation14]  }
  0x88   : > { %p3304_p10 = pnand %p3303_p9, %p3297_p2 }
  0x8a   : > { %3307 = shalt.err (!%p3304_p10)
}
  0x8b   : > { %s4300_s11 = sld [smem:[#allocation48_spill]]  ;;  %s3565_s18 = smov [#allocation21]  }
  0x8c   : > { %s635_s21 = sshll.u32 %s3565_s18, 4  ;;  %s3566_s0 = smov [#allocation24]   ;;  %s636_s21 = int_to_ptr.vmem [resolvable:$true] %s635_s21 }
  0x8d   : > { %s660_s16 = sshll.u32 %s3566_s0, 4  ;;  %s3319_s24 = scalar_lea.vmem %s636_s21, 16  ;;  %s661_s16 = int_to_ptr.vmem [resolvable:$true] %s660_s16 }
  0x8e   : > { %p3320_p11 = scmp.ne.s32.totalorder %s636_s21, %s3319_s24  ;;  %s3326_s4 = scalar_lea.vmem %s636_s21, 32 }
  0x8f   : > { %p3327_p3 = scmp.lt.s32.totalorder %s636_s21, %s636_s21  ;;  %p3328_p4 = scmp.lt.s32.totalorder %s3326_s4, %s3319_s24 }
  0x90   : > { %p3322_p12 = pnand %p3320_p11, %p3734_p7 }
  0x91   : > { %2932 = dma.hbm_to_vmem [thread:$0]  (!%p3726_p6), %s4300_s11, 16, %s611_s12, [#allocation17]  }
  0x92   : > { %p3323_p1 = pneg %p3322_p12  ;;  %p3329_p13 = por %p3328_p4, %p3327_p3 }
  0x94   : > { %p3330_p0 = pnand %p3329_p13, %p3323_p1 }
  0x96   : > { %3333 = shalt.err (!%p3330_p0)
}
  0x97   : > { %s4301_s14 = sld [smem:[#allocation51_spill]]  ;;  %s3345_s28 = scalar_lea.vmem %s661_s16, 16 }
  0x98   : > { %p3346_p2 = scmp.ne.s32.totalorder %s661_s16, %s3345_s28  ;;  %s3352_s20 = scalar_lea.vmem %s661_s16, 32 }
  0x99   : > { %p3353_p9 = scmp.lt.s32.totalorder %s661_s16, %s661_s16  ;;  %p3354_p10 = scmp.lt.s32.totalorder %s3352_s20, %s3345_s28 }
  0x9a   : > { %p3348_p5 = pnand %p3346_p2, %p3734_p7 }
  0x9b   : > { %p3355_p11 = por %p3354_p10, %p3353_p9 }
  0x9c   : > { %p3349_p8 = pneg %p3348_p5 }
  0x9d   : > { %2938 = dma.hbm_to_vmem [thread:$0]  (!%p3726_p6), %s4301_s14, 16, %s636_s21, [#allocation20]  }
  0x9e   : > { %p3356_p12 = pnand %p3355_p11, %p3349_p8 }
  0xa0   : > { %3359 = shalt.err (!%p3356_p12)
}
  0xa1   : > { %s4302_s17 = sld [smem:[#allocation54_spill]]  ;;  %s3567_s21 = smov [#allocation25]  }
  0xa2   : > { %s674_s0 = sshll.u32 %s3567_s21, 4  ;;  %s675_s0 = int_to_ptr.vmem [resolvable:$true] %s674_s0 }
  0xa3   : > { %s3371_s24 = scalar_lea.vmem %s675_s0, 16  ;;  %s3378_s4 = scalar_lea.vmem %s675_s0, 32 }
  0xa4   : > { %p3372_p1 = scmp.ne.s32.totalorder %s675_s0, %s3371_s24  ;;  %p3379_p13 = scmp.lt.s32.totalorder %s675_s0, %s675_s0 }
  0xa5   : > { %p3380_p0 = scmp.lt.s32.totalorder %s3378_s4, %s3371_s24 }
  0xa6   : > { %p3374_p3 = pnand %p3372_p1, %p3734_p7 }
  0xa7   : > { %2944 = dma.hbm_to_vmem [thread:$0]  (!%p3726_p6), %s4302_s17, 16, %s661_s16, [#allocation23]  }
  0xa8   : > { %p3375_p4 = pneg %p3374_p3  ;;  %p3381_p2 = por %p3380_p0, %p3379_p13 }
  0xaa   : > { %p3382_p5 = pnand %p3381_p2, %p3375_p4 }
  0xac   : > { %3385 = shalt.err (!%p3382_p5)
}
  0xad   : > { %2947 = dma.hbm_to_vmem [thread:$0]  (!%p3726_p6), %s4261_s19, 16, %s675_s0, [#allocation26]  }
  0xae   : > { %s2586_s27 = sadd.s32 4294967294, %s3554_s25   ;;  %s57_s16 = sadd.s32 1, %s3550_s2 }
  0xaf   : > { %p59_p7 = scmp.ge.s32.totalorder %s57_s16, 2  ;;  %s64_s30 = sadd.s32 1, %s3542_s23 }
  0xb0   : > { %p71_p8 = scmp.ne.s32.totalorder %s3542_s23, %s3538_s22  ;;  %p72_p9 = scmp.eq.s32.totalorder %s3554_s25, 0 }
  0xb1   : > { %s4339_s16 = smov (%p59_p7, %s57_s16), 0  ;;  %p77_p11 = scmp.ne.s32.totalorder %s3538_s22, %s3534_s1 }
  0xb2   : > { %p3836_p10 = por %p72_p9, %p71_p8  ;;  %s61_s20 = ssub.s32 %s3550_s2, %s4339_s16 }
  0xb3   : > { %p509_p6 = scmp.eq.s32.totalorder %s3712_s3, 1  ;;  %p62_p12 = scmp.eq.s32.totalorder %s61_s20, 0 }
  0xb4   : > { %p4304_p1 = scmp.eq.s32.totalorder %s3712_s3, 0  ;;  %p515_p13 = scmp.eq.s32.totalorder %s2586_s27, 1 }
  0xb5   : > { %p3851_p4 = por %p509_p6, %p71_p8  ;;  %p2971_p2 = scmp.lt.s32.totalorder %s3554_s25, 2 }
  0xb6   : > { %p3847_p3 = por %p4304_p1, %p77_p11  ;;  %p3858_p0 = por %p515_p13, %p77_p11 }
  0xb7   : > { %s3856_s21 = scalar_select %p62_p12, %s3542_s23, %s64_s30  }
  0xb8   : > { %s685_s24 = sand.u32 1, %s3542_s23   ;;  %s2602_s4 = sshll.u32 %s3550_s2, 7 }
  0xb9   : > { %s2601_s6 = sshll.u32 %s685_s24, 3  ;;  %s4308_s5 = sld [smem:[#allocation39_spill]] }
  0xba   : > { %s689_s9 = scalar_lea.vmem [#allocation4], %s2601_s6  ;;  %p3870_p5 = pnand %p2971_p2, %p3836_p10 }
  0xbb   : > { %s696_s11 = sshll.u32 %s689_s9, 4  ;;  %s4310_s14 = sld [smem:[#allocation40_spill]]  ;;  %s697_s11 = int_to_ptr.vmem [resolvable:$true] %s696_s11 }
  0xbc   : > { %s686_s17 = scalar_lea.sflag [#allocation5], %s685_s24  ;;  %p3388_p7 = pneg %p3870_p5 }
  0xbd   : > { %s3399_s12 = scalar_lea.vmem %s697_s11, 128 }
  0xbe   : > { %p3400_p8 = scmp.ne.s32.totalorder %s697_s11, %s3399_s12 }
  0xbf   : > { %s694_s7 = scalar_lea.hbm %s4308_s5, %s2602_s4  ;;  %s3568_s5 = smov [#allocation4]  }
  0xc0   : > { %p3402_p9 = pnand %p3400_p8, %p3388_p7  ;;  %s3404_s9 = sshll.u32 %s3568_s5, 4  ;;  %s3405_s9 = int_to_ptr.vmem [resolvable:$false] %s3404_s9 }
  0xc1   : > { %s3877_s15 = scalar_lea.hbm %s4310_s14, %s2602_s4  ;;  %s3406_s28 = scalar_lea.vmem %s3405_s9, 256 }
  0xc2   : > { %p3403_p10 = pneg %p3402_p9  ;;  %p3407_p11 = scmp.lt.s32.totalorder %s697_s11, %s3405_s9 }
  0xc3   : > { %p3408_p6 = scmp.lt.s32.totalorder %s3406_s28, %s3399_s12 }
  0xc5   : > { %p3409_p12 = por %p3408_p6, %p3407_p11 }
  0xc7   : > { %p3410_p1 = pnand %p3409_p12, %p3403_p10 }
  0xc9   : > { %3413 = shalt.err (!%p3410_p1)
}
  0xca   : > { %2951 = dma.hbm_to_vmem [thread:$0]  (!%p3870_p5), %s694_s7, 128, %s697_s11, %s686_s17  }
  0xcb   : > { %s703_s14 = sand.u32 1, %s3554_s25   ;;  %s707_s24 = scalar_lea.vmem [#allocation7], %s2601_s6 }
  0xcc   : > { %s715_s4 = sshll.u32 %s707_s24, 4  ;;  %s704_s20 = scalar_lea.sflag [#allocation8], %s703_s14  ;;  %s716_s4 = int_to_ptr.vmem [resolvable:$true] %s715_s4 }
  0xcd   : > { %s3427_s27 = scalar_lea.vmem %s716_s4, 128  ;;  %s3569_s30 = smov [#allocation7]  }
  0xce   : > { %p3428_p13 = scmp.ne.s32.totalorder %s716_s4, %s3427_s27  ;;  %s3432_s12 = sshll.u32 %s3569_s30, 4  ;;  %s3433_s12 = int_to_ptr.vmem [resolvable:$false] %s3432_s12 }
  0xcf   : > { %s3434_s5 = scalar_lea.vmem %s3433_s12, 256  ;;  %p3435_p9 = scmp.lt.s32.totalorder %s716_s4, %s3433_s12 }
  0xd0   : > { %p3430_p2 = pnand %p3428_p13, %p3388_p7  ;;  %p3436_p10 = scmp.lt.s32.totalorder %s3434_s5, %s3427_s27 }
  0xd2   : > { %p3431_p8 = pneg %p3430_p2  ;;  %p3437_p11 = por %p3436_p10, %p3435_p9 }
  0xd4   : > { %p3438_p6 = pnand %p3437_p11, %p3431_p8 }
  0xd6   : > { %3441 = shalt.err (!%p3438_p6)
}
  0xd7   : > { %2954 = dma.hbm_to_vmem [thread:$0]  (!%p3870_p5), %s3877_s15, 128, %s716_s4, %s704_s20  }
  0xd8   : > { %p4311_p12 = scmp.ne.s32.totalorder %s4289_s26, 0 }
  0xd9   : > { %s3896_s7 = sand.u32 (!%p4311_p12), 1, %s3538_s22  }
  0xda   : > { %724 = sbr.rel (%p4311_p12) target bundleno = 3726 (0xe8e), region = 100  ;;  %s3899_s11 = sshll.u32 (!%p4311_p12), %s3896_s7, 3 }
  0xdb   : > { %s727_s17 = scalar_lea.sflag (!%p4311_p12), [#allocation5], %s3896_s7  ;;  %s730_s6 = scalar_lea.vmem (!%p4311_p12), [#allocation4], %s3899_s11 }
  0xdf   : > { %3493 = dma.done.wait (%p3847_p3), %s727_s17, 128  }
  0xe0   : > { %3495 = vsyncadd (%p3847_p3), %s727_s17, 4294967168  ;;  %s735_s13 = sand.u32 1, %s3712_s3   ;;  %s739_s26 = scalar_lea.vmem [#allocation7], %s3899_s11 }
  0xe1   : > { %s736_s15 = scalar_lea.sflag [#allocation8], %s735_s13 }
  0xe2   : > { %3497 = dma.done.wait (%p3847_p3), %s736_s15, 128  }
  0xe3   : > { %3499 = vsyncadd (%p3847_p3), %s736_s15, 4294967168  ;;  %p4312_p5 = scmp.eq.s32.totalorder %s3712_s3, 0 }
  0xe5   : > { %3501 = dma.done.wait (%p4312_p5), [#allocation8], 16   ;;  %p4313_p7 = pmov %p4312_p5 }
  0xe6   : > { %p4314_p1 = pmov %p4312_p5 }
  0xe7   : > { %3503 = vsyncadd (%p4313_p7), [#allocation8], 4294967280 }
  0xe8   : > { %3505 = dma.done.wait (%p4314_p1), [#allocation11], 32   ;;  %p4315_p13 = pmov %p4314_p1 }
  0xe9   : > { %p4316_p2 = pmov %p4314_p1 }
  0xea   : > { %3507 = vsyncadd (%p4315_p13), [#allocation11], 4294967264 }
  0xeb   : > { %3509 = dma.done.wait (%p4316_p2), [#allocation14], 32   ;;  %p4317_p8 = pmov %p4314_p1 }
  0xec   : > { %p4318_p3 = pmov %p4314_p1 }
  0xed   : > { %3511 = vsyncadd (%p4317_p8), [#allocation14], 4294967264 }
  0xee   : > { %3513 = dma.done.wait (%p4318_p3), [#allocation17], 32   ;;  %p4319_p9 = pmov %p4314_p1 }
  0xef   : > { %p4320_p10 = pmov %p4314_p1 }
  0xf0   : > { %3515 = vsyncadd (%p4319_p9), [#allocation17], 4294967264 }
  0xf1   : > { %3517 = dma.done.wait (%p4320_p10), [#allocation20], 32   ;;  %p4321_p11 = pmov %p4314_p1 }
  0xf2   : > { %p4322_p6 = pmov %p4314_p1 }
  0xf3   : > { %3519 = vsyncadd (%p4321_p11), [#allocation20], 4294967264 }
  0xf4   : > { %3521 = dma.done.wait (%p4322_p6), [#allocation23], 32   ;;  %p4323_p12 = pmov %p4314_p1 }
  0xf5   : > { %p4324_p5 = pmov %p4314_p1 }
  0xf6   : > { %3523 = vsyncadd (%p4323_p12), [#allocation23], 4294967264 }
  0xf7   : > { %3525 = dma.done.wait (%p4324_p5), [#allocation26], 16   ;;  %p4325_p7 = pmov %p4314_p1 }
  0xf8   : > { %vm857_vm0 = vcmask 261120   ;;  %v3941_v0 = vld [vmem:[%s730_s6] sm:$0xff]  ;;  %v1053_v1 = vld [vmem:[%s739_s26] sm:$0xff]  ;;  %v3570_v14 = vmov 0.0   ;;  %vm3571_vm1 = vmmov 0   ;;  %s4326_s29 = sld [smem:[#allocation45_spill]] }
  0xf9   : > { %3527 = vsyncadd (%p4325_p7), [#allocation26], 4294967280  ;;  %v858_v2 = vsel %vm857_vm0, %v3941_v0, 0.0  ;;  %v1057_v3 = vsel %vm857_vm0, %v1053_v1, 0.0  ;;  %2718 = vmatprep.subr.mxu0 %v3570_v14  ;;  %v889_v15 = vld [vmem:[%s4250_s8 + $0x18] sm:$0xff]  ;;  %2756 = vmatprep.subr.mxu1 %v3570_v14  ;;  %v888_v16 = vld [vmem:[%s4250_s8 + $0x10] sm:$0xff] }
  0xfa   : > { %859 = vadd.xlane.f32.xlu0 %v858_v2  ;;  %2719 = vmatpush3.msra.mxu0 %v889_v15  ;;  %v887_v17 = vld [vmem:[%s4250_s8 + $0x8] sm:$0xff]  ;;  %v886_v18 = vld [vmem:[%s4250_s8] sm:$0xff]  ;;  %v2621_v26 = vld [vmem:[#allocation9] ss:$0 sm:$0xff]  ;;  %vm1172_vm2 = vcmask 64512   ;;  %s3572_s27 = smov 120  }
  0xfb   : > { %2720 = vmatprep.subr.mxu0 %v3570_v14  ;;  %2726 = vmatprep.mubr.msk.f32.mxu0 %vm3571_vm1, %v3570_v14  ;;  %v2622_v28 = vld [vmem:[#allocation10] ss:$0 sm:$0xff]  ;;  %v973_v31 = vld [vmem:[%s4252_s10 + $0x18] sm:$0xff]  ;;  %v971_v33 = vld [vmem:[%s4252_s10 + $0x8] sm:$0xff]  ;;  %s3573_s30 = smov 112   ;;  %s4327_s17 = sld [smem:[#allocation49_spill]] }
  0xfc   : > { %2721 = vmatpush3.msra.mxu0 %v888_v16  ;;  %2758 = vmatprep.mubr.msk.f32.mxu1 %vm3571_vm1, %v3570_v14  ;;  %v972_v32 = vld [vmem:[%s4252_s10 + $0x10] sm:$0xff]  ;;  %v970_v35 = vld [vmem:[%s4252_s10] sm:$0xff]  ;;  %v2623_v45 = vld [vmem:[#allocation16] ss:$0 sm:$0xff]  ;;  %s3574_s15 = smov 104   ;;  %s4328_s4 = sld [smem:[#allocation53_spill]] }
  0xfd   : > { %2722 = vmatprep.subr.mxu0 %v3570_v14  ;;  %v2627_v38 = vld [vmem:[#allocation12] ss:$0 sm:$0xff]  ;;  %v2628_v42 = vld [vmem:[#allocation13] ss:$0 sm:$0xff]  ;;  %v2625_v49 = vld [vmem:[#allocation18] ss:$0 sm:$0xff] }
  0xfe   : > { %1058 = vadd.xlane.f32.xlu0 %v1057_v3  ;;  %2723 = vmatpush3.msra.mxu0 %v887_v17  ;;  %v1088_v37 = vld [vmem:[%s4326_s29 + $0x18] sm:$0xff]  ;;  %v1087_v39 = vld [vmem:[%s4326_s29 + $0x10] sm:$0xff]  ;;  %v1086_v40 = vld [vmem:[%s4326_s29 + $0x8] sm:$0xff]  ;;  %s4329_s26 = sld [smem:[#allocation55_spill]]  ;;  %s3575_s9 = smov [#allocation27]  }
  0xff   : > { %2724 = vmatprep.subr.mxu0 %v3570_v14  ;;  %v1085_v43 = vld [vmem:[%s4326_s29] sm:$0xff]  ;;  %v2629_v54 = vld [vmem:[#allocation15] ss:$0 sm:$0xff]  ;;  %s4330_s24 = sld [smem:[#allocation38_spill]] }
 0x100   : > { %2725 = vmatpush3.msra.mxu0 %v886_v18  ;;  %s4331_s6 = sld [smem:[#allocation56_spill]] }
 0x101   : > { %2729 = vmatprep.subr.mxu0 %v3570_v14 }
 0x105   : > { %s2654_s20 = sshll.u32 %s4330_s24, 7 }
 0x106   : > { %s2364_s13 = scalar_lea.hbm %s4331_s6, %s2654_s20 }
 0x183   : > { %v860_v4 = vpop.xlane.xlu0 %859 }
 0x184   : > { %v862_v5 = vmul.f32 0.03125, %v860_v4 }
 0x186   : > { %v863_v6 = vsub.f32 %v3941_v0, %v862_v5 }
 0x187   : > { %v1059_v7 = vpop.xlane.xlu0 %1058 }
 0x188   : > { %v1061_v8 = vmul.f32 0.03125, %v1059_v7  ;;  %v864_v9 = vmul.f32 %v863_v6, %v863_v6 }
 0x18a   : > { %v1062_v10 = vsub.f32 %v1053_v1, %v1061_v8  ;;  %v865_v11 = vsel %vm857_vm0, %v864_v9, 0.0 }
 0x18b   : > { %866 = vadd.xlane.f32.xlu1 %v865_v11 }
 0x18c   : > { %v1063_v12 = vmul.f32 %v1062_v10, %v1062_v10 }
 0x18e   : > { %v1064_v13 = vsel %vm857_vm0, %v1063_v12, 0.0 }
 0x18f   : > { %1065 = vadd.xlane.f32.xlu1 %v1064_v13 }
 0x214   : > { %v867_v19 = vpop.xlane.xlu1 %866 }
 0x215   : > { %v868_v20 = vmul.f32 0.03125, %v867_v19 }
 0x217   : > { %v869_v21 = vadd.f32 1e-05, %v868_v20  ;;  %v1500_v20 = vld [vmem:[%s4327_s17 + $0x8] sm:$0xff] }
 0x218   : > { %v1066_v22 = vpop.xlane.xlu1 %1065 }
 0x219   : > { %3050 = vrsqrt.f32 %v869_v21  ;;  %v1067_v23 = vmul.f32 0.03125, %v1066_v22 }
 0x21b   : > { %v1068_v24 = vadd.f32 1e-05, %v1067_v23 }
 0x21d   : > { %3052 = vrsqrt.f32 %v1068_v24  ;;  %v1333_v24 = vld [vmem:[%s4327_s17] sm:$0xff] }
 0x226   : > { %v3051_v25 = vpop.eup %3050 }
 0x227   : > { %v871_v27 = vmul.f32 %v3051_v25, %v863_v6 }
 0x229   : > { %v878_v29 = vmul.f32 %v2621_v26, %v871_v27 }
 0x22a   : > { %v3053_v34 = vpop.eup %3052 }
 0x22b   : > { %v885_v30 = vadd.f32 %v2622_v28, %v878_v29  ;;  %v1070_v36 = vmul.f32 %v3053_v34, %v1062_v10 }
 0x22d   : > { %2727 = vmatmul.mubr.msk.f32.vlgmr.msra.gmra.mxu0 %vm857_vm0, %v885_v30  ;;  %v1077_v41 = vmul.f32 %v2627_v38, %v1070_v36 }
 0x22e   : > { %2730 = vmatpush3.msra.mxu0 %v973_v31  ;;  %2737 = vmatprep.mubr.msk.f32.mxu0 %vm3571_vm1, %v3570_v14 }
 0x22f   : > { %2731 = vmatprep.subr.mxu0 %v3570_v14  ;;  %v1084_v44 = vadd.f32 %v2628_v42, %v1077_v41 }
 0x230   : > { %2732 = vmatpush3.msra.mxu0 %v972_v32 }
 0x231   : > { %2733 = vmatprep.subr.mxu0 %v3570_v14 }
 0x232   : > { %2734 = vmatpush3.msra.mxu0 %v971_v33 }
 0x233   : > { %2735 = vmatprep.subr.mxu0 %v3570_v14 }
 0x234   : > { %2736 = vmatpush3.msra.mxu0 %v970_v35 }
 0x235   : > { %2738 = vmatmul.mubr.msk.f32.vlgmr.msra.gmra.mxu0 %vm857_vm0, %v885_v30  ;;  %2740 = vmatprep.subr.mxu0 %v3570_v14 }
 0x236   : > { %2741 = vmatpush3.msra.mxu0 %v1088_v37  ;;  %2748 = vmatprep.mubr.msk.f32.mxu0 %vm3571_vm1, %v3570_v14 }
 0x237   : > { %2742 = vmatprep.subr.mxu0 %v3570_v14 }
 0x238   : > { %2743 = vmatpush3.msra.mxu0 %v1087_v39 }
 0x239   : > { %2744 = vmatprep.subr.mxu0 %v3570_v14 }
 0x23a   : > { %2745 = vmatpush3.msra.mxu0 %v1086_v40 }
 0x23b   : > { %2746 = vmatprep.subr.mxu0 %v3570_v14 }
 0x23c   : > { %2747 = vmatpush3.msra.mxu0 %v1085_v43 }
 0x23d   : > { %2749 = vmatmul.mubr.msk.f32.vlgmr.msra.gmra.mxu0 %vm857_vm0, %v1084_v44  ;;  %2751 = vmatprep.subr.mxu0 %v3570_v14 }
 0x23e   : > { %2753 = vmatprep.mubr.msk.f32.mxu0 %vm3571_vm1, %v3570_v14 }
 0x2ed   : > { %v966_v46 = vpop.f32.mrf.mxu0 }
 0x2ee   : > { %v967_v47 = vadd.f32 %v2623_v45, %v966_v46 }
 0x2ef   : > { %v2728_v48 = vpop.f32.mrf.mxu0 }
 0x2f0   : > { %1051 = vst.msk [vmem:[#allocation2] sm:$0xff] %vm857_vm0, %v967_v47 }
 0x2f5   : > { %v1047_v50 = vpop.f32.mrf.mxu0 }
 0x2f6   : > { %v1048_v51 = vadd.f32 %v2625_v49, %v1047_v50  ;;  %v1812_v49 = vld [vmem:[%s4327_s17 + $0x10] sm:$0xff] }
 0x2f7   : > { %v2739_v52 = vpop.f32.mrf.mxu0  ;;  %v4013_v53 = vld [vmem:[#allocation2] sm:$0xff] }
 0x2f8   : > { %1052 = vst.msk [vmem:[#allocation3] sm:$0xff] %vm857_vm0, %v1048_v51  ;;  %1336 = vrot.lane.b32.xlu0 %v4013_v53, %s3572_s27  ;;  %2752 = vmatpush3.xpose.msk.msra.mxu0 %vm1172_vm2, %v4013_v53 }
 0x2f9   : > { %2761 = vmatprep.subr.mxu0 %v3570_v14 }
 0x2fd   : > { %v1165_v55 = vpop.f32.mrf.mxu0 }
 0x2fe   : > { %v1166_v56 = vadd.f32 %v2629_v54, %v1165_v55 }
 0x2ff   : > { %v2750_v57 = vpop.f32.mrf.mxu0  ;;  %v4021_v58 = vld [vmem:[#allocation3] sm:$0xff] }
 0x300   : > { %v4023_v59 = vmul.f32 0.35355338, %v1166_v56  ;;  %2757 = vmatpush3.msra.mxu1 %v4021_v58 }
 0x301   : > { %2766 = vmatprep.subr.mxu1 %v3570_v14 }
 0x302   : > { %1334 = vrot.lane.b32.xlu1 %v4023_v59, %s3572_s27  ;;  %2754 = vmatmul.mubr.msk.f32.vlgmr.msra.gmra.mxu0 %vm1172_vm2, %v4023_v59 }
 0x303   : > { %2763 = vmatprep.mubr.msk.f32.mxu0 %vm3571_vm1, %v3570_v14 }
 0x36a   : > { %v1337_v60 = vpop.permute.xlu0 %1336 }
 0x36b   : > { %2762 = vmatpush3.xpose.msk.msra.mxu0 %vm1172_vm2, %v1337_v60 }
 0x36c   : > { %2771 = vmatprep.subr.mxu0 %v3570_v14 }
 0x374   : > { %v1335_v61 = vpop.permute.xlu1 %1334 }
 0x375   : > { %2764 = vmatmul.mubr.msk.f32.vlgmr.msra.gmra.mxu0 %vm1172_vm2, %v1335_v61 }
 0x376   : > { %2773 = vmatprep.mubr.msk.f32.mxu0 %vm3571_vm1, %v3570_v14  ;;  %2772 = vmatpush3.msra.mxu0 %v1500_v20 }
 0x377   : > { %2781 = vmatprep.subr.mxu0 %v3570_v14 }
 0x3c2   : > { %v1245_v62 = vpop.f32.mrf.mxu0 }
 0x3c3   : > { %v1249_v63 = vsel %vm1172_vm2, %v1245_v62, -inf }
 0x3c4   : > { %1250 = vmax.xlane.f32.xlu1 %v1249_v63  ;;  %v2755_v1 = vpop.f32.mrf.mxu0 }
 0x435   : > { %v1408_v2 = vpop.f32.mrf.mxu0 }
 0x436   : > { %v1412_v3 = vsel %vm1172_vm2, %v1408_v2, -inf }
 0x437   : > { %1413 = vmax.xlane.f32.xlu0 %v1412_v3  ;;  %v2765_v4 = vpop.f32.mrf.mxu0 }
 0x44d   : > { %v1251_v5 = vpop.xlane.xlu1 %1250 }
 0x44e   : > { %v1252_v6 = vsub.f32 %v1245_v62, %v1251_v5  ;;  %v2052_v62 = vld [vmem:[%s4327_s17 + $0x18] sm:$0xff] }
 0x450   : > { %v1253_v7 = vmul.f32 1.442695, %v1252_v6 }
 0x452   : > { %3054 = vpow2.f32 %v1253_v7 }
 0x45f   : > { %v3055_v8 = vpop.eup %3054 }
 0x460   : > { %v1255_v9 = vsel %vm1172_vm2, %v3055_v8, 0.0 }
 0x461   : > { %1256 = vadd.xlane.f32.xlu0 %v1255_v9  ;;  %v2647_v9 = vld [vmem:[#allocation19] ss:$0 sm:$0xff] }
 0x477   : > { %1424 = vrot.lane.b32.xlu0 %v4021_v58, %s3572_s27  ;;  %s848_s27 = scalar_lea.vmem [#allocation27], %s3899_s11  ;;  %s3446_s11 = sshll.u32 %s3575_s9, 4  ;;  %s3447_s11 = int_to_ptr.vmem [resolvable:$false] %s3446_s11 }
 0x478   : > { %s3448_s28 = scalar_lea.vmem %s3447_s11, 256 }
 0x4c0   : > { %v1414_v10 = vpop.xlane.xlu0 %1413 }
 0x4c1   : > { %v1415_v11 = vsub.f32 %v1408_v2, %v1414_v10 }
 0x4c3   : > { %v1416_v12 = vmul.f32 1.442695, %v1415_v11 }
 0x4c5   : > { %3056 = vpow2.f32 %v1416_v12 }
 0x4d2   : > { %v3057_v13 = vpop.eup %3056 }
 0x4d3   : > { %v1418_v15 = vsel %vm1172_vm2, %v3057_v13, 0.0 }
 0x4d4   : > { %1419 = vadd.xlane.f32.xlu1 %v1418_v15 }
 0x4e5   : > { %1649 = vrot.lane.b32.xlu1 %v4013_v53, %s3573_s30 }
 0x4e9   : > { %1647 = vrot.lane.b32.xlu1 %v4023_v59, %s3573_s30 }
 0x4ea   : > { %v1257_v16 = vpop.xlane.xlu0 %1256 }
 0x4eb   : > { %3058 = vrcp.f32 %v1257_v16 }
 0x4ee   : > { %v1425_v19 = vpop.permute.xlu0 %1424 }
 0x4f8   : > { %v3059_v17 = vpop.eup %3058 }
 0x4f9   : > { %v1259_v18 = vmul.f32 %v3059_v17, %v3055_v8 }
 0x4fb   : > { %2759 = vmatmul.mubr.msk.f32.vlgmr.msra.gmra.mxu1 %vm1172_vm2, %v1259_v18 }
 0x4fc   : > { %2767 = vmatpush3.msra.mxu1 %v1425_v19  ;;  %2768 = vmatprep.mubr.msk.f32.mxu1 %vm3571_vm1, %v3570_v14 }
 0x4fd   : > { %2776 = vmatprep.subr.mxu1 %v3570_v14 }
 0x55d   : > { %v1420_v21 = vpop.xlane.xlu1 %1419 }
 0x55e   : > { %3060 = vrcp.f32 %v1420_v21  ;;  %v2170_v21 = vld [vmem:[%s4328_s4 + $0x18] sm:$0xff] }
 0x561   : > { %v1650_v27 = vpop.permute.xlu1 %1649 }
 0x565   : > { %v1648_v30 = vpop.permute.xlu1 %1647 }
 0x56b   : > { %v3061_v22 = vpop.eup %3060 }
 0x56c   : > { %v1422_v23 = vmul.f32 %v3061_v22, %v3057_v13  ;;  %v2168_v22 = vld [vmem:[%s4328_s4 + $0x8] sm:$0xff] }
 0x56e   : > { %2769 = vmatmul.mubr.msk.f32.vlgmr.msra.gmra.mxu1 %vm1172_vm2, %v1422_v23  ;;  %v2167_v23 = vld [vmem:[%s4328_s4] sm:$0xff] }
 0x56f   : > { %2777 = vmatpush3.msra.mxu1 %v1333_v24  ;;  %2778 = vmatprep.mubr.msk.f32.mxu1 %vm3571_vm1, %v3570_v14  ;;  %v2271_v24 = vld [vmem:[%s4329_s26 + $0x78] sm:$0xff] }
 0x570   : > { %2786 = vmatprep.subr.mxu1 %v3570_v14 }
 0x5bb   : > { %v1329_v25 = vpop.f32.mrf.mxu1 }
 0x5bc   : > { %2779 = vmatmul.mubr.msk.f32.vlgmr.msra.gmra.mxu1 %vm1172_vm2, %v1329_v25  ;;  %v2270_v25 = vld [vmem:[%s4329_s26 + $0x70] sm:$0xff] }
 0x5bd   : > { %v2760_v26 = vpop.f32.mrf.mxu1  ;;  %2788 = vmatprep.mubr.msk.f32.mxu1 %vm3571_vm1, %v3570_v14 }
 0x5be   : > { %v2269_v26 = vld [vmem:[%s4329_s26 + $0x68] sm:$0xff] }
 0x62e   : > { %v1496_v28 = vpop.f32.mrf.mxu1 }
 0x62f   : > { %2774 = vmatmul.mubr.msk.f32.vlgmr.msra.gmra.mxu0 %vm1172_vm2, %v1496_v28 }
 0x630   : > { %2782 = vmatpush3.xpose.msk.msra.mxu0 %vm1172_vm2, %v1650_v27  ;;  %v2770_v29 = vpop.f32.mrf.mxu1  ;;  %2783 = vmatprep.mubr.msk.f32.mxu0 %vm3571_vm1, %v3570_v14  ;;  %v2268_v27 = vld [vmem:[%s4329_s26 + $0x60] sm:$0xff] }
 0x631   : > { %2791 = vmatprep.subr.mxu0 %v3570_v14 }
 0x633   : > { %2784 = vmatmul.mubr.msk.f32.vlgmr.msra.gmra.mxu0 %vm1172_vm2, %v1648_v30 }
 0x634   : > { %2793 = vmatprep.mubr.msk.f32.mxu0 %vm3571_vm1, %v3570_v14  ;;  %2792 = vmatpush3.msra.mxu0 %v1812_v49  ;;  %v2650_v49 = vld [vmem:[#allocation24] ss:$0 sm:$0xff] }
 0x635   : > { %2801 = vmatprep.subr.mxu0 %v3570_v14 }
 0x67c   : > { %v1643_v31 = vpop.f32.mrf.mxu1 }
 0x67e   : > { %v2780_v32 = vpop.f32.mrf.mxu1 }
 0x67f   : > { %v2648_v32 = vld [vmem:[#allocation21] ss:$0 sm:$0xff] }
 0x6ef   : > { %v1570_v33 = vpop.f32.mrf.mxu0 }
 0x6f1   : > { %v2775_v34 = vpop.f32.mrf.mxu0 }
 0x6f2   : > { %v2649_v34 = vld [vmem:[#allocation22] ss:$0 sm:$0xff] }
 0x6f3   : > { %v1721_v35 = vpop.f32.mrf.mxu0 }
 0x6f4   : > { %v1725_v36 = vsel %vm1172_vm2, %v1721_v35, -inf }
 0x6f5   : > { %1726 = vmax.xlane.f32.xlu1 %v1725_v36  ;;  %v2785_v37 = vpop.f32.mrf.mxu0 }
 0x6f6   : > { %v2267_v37 = vld [vmem:[%s4329_s26 + $0x58] sm:$0xff] }
 0x706   : > { %1889 = vrot.lane.b32.xlu1 %v4013_v53, %s3574_s15 }
 0x70a   : > { %1887 = vrot.lane.b32.xlu1 %v4023_v59, %s3574_s15 }
 0x77e   : > { %v1727_v38 = vpop.xlane.xlu1 %1726 }
 0x77f   : > { %v1728_v39 = vsub.f32 %v1721_v35, %v1727_v38  ;;  %v2266_v38 = vld [vmem:[%s4329_s26 + $0x50] sm:$0xff] }
 0x781   : > { %v1729_v40 = vmul.f32 1.442695, %v1728_v39  ;;  %v2265_v39 = vld [vmem:[%s4329_s26 + $0x48] sm:$0xff] }
 0x782   : > { %v1890_v46 = vpop.permute.xlu1 %1889 }
 0x783   : > { %3062 = vpow2.f32 %v1729_v40  ;;  %v2264_v40 = vld [vmem:[%s4329_s26 + $0x40] sm:$0xff] }
 0x786   : > { %v1888_v48 = vpop.permute.xlu1 %1887 }
 0x790   : > { %v3063_v41 = vpop.eup %3062 }
 0x791   : > { %v1731_v42 = vsel %vm1172_vm2, %v3063_v41, 0.0 }
 0x792   : > { %1732 = vadd.xlane.f32.xlu0 %v1731_v42  ;;  %v2262_v42 = vld [vmem:[%s4329_s26 + $0x30] sm:$0xff] }
 0x7a8   : > { %1736 = vrot.lane.b32.xlu0 %v4021_v58, %s3573_s30  ;;  %s2366_s30 = sshll.u32 %s848_s27, 4  ;;  %s2367_s30 = int_to_ptr.vmem [resolvable:$true] %s2366_s30 }
 0x7a9   : > { %s3442_s3 = scalar_lea.vmem %s2367_s30, 128  ;;  %p3449_p8 = scmp.lt.s32.totalorder %s2367_s30, %s3447_s11 }
 0x7aa   : > { %p3443_p1 = scmp.ne.s32.totalorder %s2367_s30, %s3442_s3  ;;  %p3450_p3 = scmp.lt.s32.totalorder %s3448_s28, %s3442_s3 }
 0x7ac   : > { %p3444_p13 = pnand %p3443_p1, %p3851_p4  ;;  %p3451_p9 = por %p3450_p3, %p3449_p8 }
 0x7ae   : > { %p3445_p2 = pneg %p3444_p13 }
 0x7b0   : > { %p3452_p10 = pnand %p3451_p9, %p3445_p2 }
 0x81b   : > { %v1733_v43 = vpop.xlane.xlu0 %1732 }
 0x81c   : > { %3064 = vrcp.f32 %v1733_v43  ;;  %v2261_v43 = vld [vmem:[%s4329_s26 + $0x28] sm:$0xff] }
 0x81f   : > { %v1737_v44 = vpop.permute.xlu0 %1736 }
 0x820   : > { %2787 = vmatpush3.msra.mxu1 %v1737_v44  ;;  %v2260_v44 = vld [vmem:[%s4329_s26 + $0x20] sm:$0xff] }
 0x821   : > { %2796 = vmatprep.subr.mxu1 %v3570_v14 }
 0x829   : > { %v3065_v45 = vpop.eup %3064 }
 0x82a   : > { %v1735_v47 = vmul.f32 %v3065_v45, %v3063_v41  ;;  %v2263_v41 = vld [vmem:[%s4329_s26 + $0x38] sm:$0xff] }
 0x82b   : > { %v2259_v45 = vld [vmem:[%s4329_s26 + $0x18] sm:$0xff] }
 0x82c   : > { %2789 = vmatmul.mubr.msk.f32.vlgmr.msra.gmra.mxu1 %vm1172_vm2, %v1735_v47  ;;  %v2257_v47 = vld [vmem:[%s4329_s26 + $0x8] sm:$0xff] }
 0x82d   : > { %2797 = vmatpush3.xpose.msk.msra.mxu1 %vm1172_vm2, %v1890_v46  ;;  %2798 = vmatprep.mubr.msk.f32.mxu1 %vm3571_vm1, %v3570_v14  ;;  %v2258_v46 = vld [vmem:[%s4329_s26 + $0x10] sm:$0xff] }
 0x82e   : > { %2806 = vmatprep.subr.mxu1 %v3570_v14 }
 0x830   : > { %2799 = vmatmul.mubr.msk.f32.vlgmr.msra.gmra.mxu1 %vm1172_vm2, %v1888_v48  ;;  %v2256_v48 = vld [vmem:[%s4329_s26] sm:$0xff] }
 0x831   : > { %2808 = vmatprep.mubr.msk.f32.mxu1 %vm3571_vm1, %v3570_v14  ;;  %2807 = vmatpush3.msra.mxu1 %v2052_v62 }
 0x832   : > { %2822 = vmatprep.subr.mxu1 %v3570_v14 }
 0x8ec   : > { %v1808_v50 = vpop.f32.mrf.mxu1 }
 0x8ed   : > { %2794 = vmatmul.mubr.msk.f32.vlgmr.msra.gmra.mxu0 %vm1172_vm2, %v1808_v50 }
 0x8ee   : > { %v2790_v51 = vpop.f32.mrf.mxu1  ;;  %2803 = vmatprep.mubr.msk.f32.mxu0 %vm3571_vm1, %v3570_v14 }
 0x8f0   : > { %v1961_v52 = vpop.f32.mrf.mxu1 }
 0x8f1   : > { %v1965_v53 = vsel %vm1172_vm2, %v1961_v52, -inf }
 0x8f2   : > { %1966 = vmax.xlane.f32.xlu0 %v1965_v53  ;;  %v2800_v54 = vpop.f32.mrf.mxu1 }
 0x908   : > { %1976 = vrot.lane.b32.xlu0 %v4021_v58, %s3574_s15  ;;  %v1644_v58 = vadd.f32 %v1643_v31, %v1570_v33  ;;  %s2352_s15 = scalar_lea.sflag [#allocation6], %s3896_s7 }
 0x97b   : > { %v1967_v55 = vpop.xlane.xlu0 %1966 }
 0x97c   : > { %v1968_v56 = vsub.f32 %v1961_v52, %v1967_v55 }
 0x97e   : > { %v1969_v57 = vmul.f32 1.442695, %v1968_v56 }
 0x97f   : > { %v1977_v59 = vpop.permute.xlu0 %1976 }
 0x980   : > { %3066 = vpow2.f32 %v1969_v57  ;;  %2802 = vmatpush3.msra.mxu0 %v1977_v59  ;;  %v2652_v59 = vld [vmem:[#allocation25] ss:$0 sm:$0xff] }
 0x981   : > { %2811 = vmatprep.subr.mxu0 %v3570_v14 }
 0x98d   : > { %v3067_v60 = vpop.eup %3066 }
 0x98e   : > { %v1971_v61 = vsel %vm1172_vm2, %v3067_v60, 0.0 }
 0x98f   : > { %1972 = vadd.xlane.f32.xlu1 %v1971_v61 }
 0x9ad   : > { %v1882_v63 = vpop.f32.mrf.mxu0 }
 0x9ae   : > { %v1886_v1 = vadd.f32 %v1882_v63, %v1644_v58 }
 0x9af   : > { %v2795_v2 = vpop.f32.mrf.mxu0 }
 0xa18   : > { %v1973_v3 = vpop.xlane.xlu1 %1972 }
 0xa19   : > { %3068 = vrcp.f32 %v1973_v3 }
 0xa26   : > { %v3069_v4 = vpop.eup %3068 }
 0xa27   : > { %v1975_v5 = vmul.f32 %v3069_v4, %v3067_v60 }
 0xa29   : > { %2804 = vmatmul.mubr.msk.f32.vlgmr.msra.gmra.mxu0 %vm1172_vm2, %v1975_v5 }
 0xa2a   : > { %2819 = vmatprep.mubr.msk.f32.mxu0 %vm3571_vm1, %v3570_v14  ;;  %2812 = vmatpush3.msra.mxu0 %v2170_v21 }
 0xa2b   : > { %2813 = vmatprep.subr.mxu0 %v3570_v14 }
 0xae9   : > { %v2048_v6 = vpop.f32.mrf.mxu0 }
 0xaea   : > { %2809 = vmatmul.mubr.msk.f32.vlgmr.msra.gmra.mxu1 %vm1172_vm2, %v2048_v6 }
 0xaeb   : > { %v2805_v7 = vpop.f32.mrf.mxu0  ;;  %2854 = vmatprep.mubr.msk.f32.mxu1 %vm3571_vm1, %v3570_v14  ;;  %2823 = vmatpush3.msra.mxu1 %v2271_v24 }
 0xaec   : > { %2824 = vmatprep.subr.mxu1 %v3570_v14 }
 0xaed   : > { %2825 = vmatpush3.msra.mxu1 %v2270_v25 }
 0xaee   : > { %2826 = vmatprep.subr.mxu1 %v3570_v14 }
 0xaef   : > { %2827 = vmatpush3.msra.mxu1 %v2269_v26 }
 0xaf0   : > { %2828 = vmatprep.subr.mxu1 %v3570_v14 }
 0xaf1   : > { %2829 = vmatpush3.msra.mxu1 %v2268_v27 }
 0xaf2   : > { %2830 = vmatprep.subr.mxu1 %v3570_v14 }
 0xaf3   : > { %2831 = vmatpush3.msra.mxu1 %v2267_v37 }
 0xaf4   : > { %2832 = vmatprep.subr.mxu1 %v3570_v14 }
 0xaf5   : > { %2833 = vmatpush3.msra.mxu1 %v2266_v38 }
 0xaf6   : > { %2834 = vmatprep.subr.mxu1 %v3570_v14 }
 0xaf7   : > { %2835 = vmatpush3.msra.mxu1 %v2265_v39 }
 0xaf8   : > { %2836 = vmatprep.subr.mxu1 %v3570_v14 }
 0xaf9   : > { %2837 = vmatpush3.msra.mxu1 %v2264_v40 }
 0xafa   : > { %2838 = vmatprep.subr.mxu1 %v3570_v14 }
 0xafb   : > { %2839 = vmatpush3.msra.mxu1 %v2263_v41 }
 0xafc   : > { %2840 = vmatprep.subr.mxu1 %v3570_v14 }
 0xafd   : > { %2841 = vmatpush3.msra.mxu1 %v2262_v42 }
 0xafe   : > { %2842 = vmatprep.subr.mxu1 %v3570_v14 }
 0xaff   : > { %2843 = vmatpush3.msra.mxu1 %v2261_v43 }
 0xb00   : > { %2844 = vmatprep.subr.mxu1 %v3570_v14 }
 0xb01   : > { %2845 = vmatpush3.msra.mxu1 %v2260_v44 }
 0xb02   : > { %2846 = vmatprep.subr.mxu1 %v3570_v14 }
 0xb03   : > { %2847 = vmatpush3.msra.mxu1 %v2259_v45 }
 0xb04   : > { %2848 = vmatprep.subr.mxu1 %v3570_v14 }
 0xb05   : > { %2849 = vmatpush3.msra.mxu1 %v2258_v46 }
 0xb06   : > { %2850 = vmatprep.subr.mxu1 %v3570_v14 }
 0xb07   : > { %2851 = vmatpush3.msra.mxu1 %v2257_v47 }
 0xb08   : > { %2852 = vmatprep.subr.mxu1 %v3570_v14 }
 0xb09   : > { %2853 = vmatpush3.msra.mxu1 %v2256_v48 }
 0xbaa   : > { %v2122_v8 = vpop.f32.mrf.mxu1 }
 0xbab   : > { %v2126_v10 = vadd.f32 %v2122_v8, %v1886_v1 }
 0xbac   : > { %v2810_v11 = vpop.f32.mrf.mxu1 }
 0xbad   : > { %v2134_v12 = vadd.f32 %v2647_v9, %v2126_v10 }
 0xbaf   : > { %v4114_v13 = vadd.f32 %v2134_v12, %v3941_v0  ;;  %v2169_v0 = vld [vmem:[%s4328_s4 + $0x10] sm:$0xff] }
 0xbb0   : > { %2814 = vmatpush3.msra.mxu0 %v2169_v0 }
 0xbb1   : > { %v2140_v15 = vsel %vm857_vm0, %v4114_v13, 0.0  ;;  %2815 = vmatprep.subr.mxu0 %v3570_v14 }
 0xbb2   : > { %2141 = vadd.xlane.f32.xlu1 %v2140_v15  ;;  %2816 = vmatpush3.msra.mxu0 %v2168_v22 }
 0xbb3   : > { %2817 = vmatprep.subr.mxu0 %v3570_v14 }
 0xbb4   : > { %2818 = vmatpush3.msra.mxu0 %v2167_v23 }
 0xc3b   : > { %v2142_v16 = vpop.xlane.xlu1 %2141 }
 0xc3c   : > { %v2143_v17 = vmul.f32 0.03125, %v2142_v16 }
 0xc3e   : > { %v2144_v18 = vsub.f32 %v4114_v13, %v2143_v17 }
 0xc40   : > { %v2145_v19 = vmul.f32 %v2144_v18, %v2144_v18 }
 0xc42   : > { %v2146_v20 = vsel %vm857_vm0, %v2145_v19, 0.0 }
 0xc43   : > { %2147 = vadd.xlane.f32.xlu1 %v2146_v20 }
 0xccc   : > { %v2148_v28 = vpop.xlane.xlu1 %2147 }
 0xccd   : > { %v2149_v29 = vmul.f32 0.03125, %v2148_v28 }
 0xccf   : > { %v2150_v30 = vadd.f32 1e-05, %v2149_v29 }
 0xcd1   : > { %3070 = vrsqrt.f32 %v2150_v30 }
 0xcde   : > { %v3071_v31 = vpop.eup %3070 }
 0xcdf   : > { %v2152_v33 = vmul.f32 %v3071_v31, %v2144_v18 }
 0xce1   : > { %v2159_v35 = vmul.f32 %v2648_v32, %v2152_v33 }
 0xce3   : > { %v2166_v36 = vadd.f32 %v2649_v34, %v2159_v35 }
 0xce5   : > { %2820 = vmatmul.mubr.msk.f32.vlgmr.msra.gmra.mxu0 %vm857_vm0, %v2166_v36 }
 0xda5   : > { %v2247_v50 = vpop.f32.mrf.mxu0 }
 0xda6   : > { %v2248_v51 = vadd.f32 %v2650_v49, %v2247_v50 }
 0xda7   : > { %v2821_v52 = vpop.f32.mrf.mxu0 }
 0xda8   : > { %v2252_v53 = vmul.f32 0.70710677, %v2248_v51  ;;  %v2251_v55 = vmul.f32 0.5, %v2248_v51 }
 0xdaa   : > { %3072 = verf.f32 %v2252_v53 }
 0xdb7   : > { %v3073_v54 = vpop.eup %3072 }
 0xdb8   : > { %v2254_v56 = vadd.f32 1.0, %v3073_v54 }
 0xdba   : > { %v2255_v57 = vmul.f32 %v2254_v56, %v2251_v55 }
 0xdbc   : > { %2855 = vmatmul.mubr.f32.vlgmr.msra.gmra.mxu1 %v2255_v57 }
 0xe7c   : > { %v2345_v60 = vpop.f32.mrf.mxu1 }
 0xe7d   : > { %v2346_v14 = vadd.f32 %v2652_v59, %v2345_v60 }
 0xe7e   : > { %v2856_v61 = vpop.f32.mrf.mxu1 }
 0xe7f   : > { %v2349_v62 = vadd.f32 %v2346_v14, %v4114_v13 }
 0xe81   : > { %2350 = vst.msk [vmem:[%s848_s27] sm:$0xff] %vm857_vm0, %v2349_v62 }
 0xe82   : > { %3455 = shalt.err (!%p3452_p10)
}
 0xe83   : > { %s3456_s14 = scalar_lea.hbm %s2364_s13, 128  ;;  %s3460_s20 = scalar_lea.hbm %s4331_s6, 256 }
 0xe84   : > { %p3457_p11 = scmp.ne.s32.totalorder %s2364_s13, %s3456_s14  ;;  %p3461_p5 = scmp.lt.s32.totalorder %s2364_s13, %s4331_s6 }
 0xe85   : > { %p3462_p7 = scmp.lt.s32.totalorder %s3460_s20, %s3456_s14 }
 0xe86   : > { %p3458_p6 = pnand %p3457_p11, %p3851_p4 }
 0xe87   : > { %p3463_p1 = por %p3462_p7, %p3461_p5 }
 0xe88   : > { %p3459_p12 = pneg %p3458_p6 }
 0xe8a   : > { %p3464_p13 = pnand %p3463_p1, %p3459_p12 }
 0xe8c   : > { %3467 = shalt.err (!%p3464_p13)
}
 0xe8d   : > { %2909 = dma.vmem_to_hbm [thread:$0]  (%p3851_p4), %s2367_s30, 128, %s2364_s13, %s2352_s15  }
 0xe8e PF: > { %s2378_s5 = sand.u32 1, %s3534_s1   ;;  %p4332_p2 = scmp.ge.s32.totalorder %s3554_s25, 2 }
 0xe8f   : > { %s2379_s3 = scalar_lea.sflag [#allocation6], %s2378_s5 }
 0xe90   : > { %p2956_p8 = pnand %p4332_p2, %p3858_p0 }
 0xe92   : > { %p2957_p3 = pneg %p2956_p8 }
 0xe94   : > { %3529 = dma.done.wait (%p2957_p3), %s2379_s3, 128  }
 0xe95   : > { %3531 = vsyncadd (%p2957_p3), %s2379_s3, 4294967168  ;;  %s45_s25 = sadd.s32 1, %s3554_s25   ;;  %s4333_s1 = smov %s3538_s22 }
 0xe96   : > { %p42_p9 = scmp.ge.s32.totalorder %s45_s25, 4   ;;  %s4334_s22 = smov %s3542_s23 }
 0xe97   : > { %s4335_s23 = smov %s3856_s21  ;;  %s4336_s24 = smov %s3550_s2 }
 0xe98   : > { %s4337_s2 = smov %s4339_s16  ;;  %44 = sbr.rel (!%p42_p9) target bundleno = 33 (0x21), region = 211 }
 0xe9d   :  { %2384 = vsyncpa [#allocation5], 1 }
 0xe9e   :  { %2386 = vsyncpa [#allocation5 + $0x1], 1 }
 0xe9f   :  { %2387 = vsyncpa [#allocation8], 1 }
 0xea0   :  { %2389 = vsyncpa [#allocation8 + $0x1], 1 }
 0xea1   :  { %2390 = vsyncpa [#allocation11], 1 }
 0xea2   :  { %2391 = vsyncpa [#allocation14], 1 }
 0xea3   :  { %2392 = vsyncpa [#allocation17], 1 }
 0xea4   :  { %2393 = vsyncpa [#allocation20], 1 }
 0xea5   :  { %2394 = vsyncpa [#allocation23], 1 }
 0xea6   :  { %2395 = vsyncpa [#allocation26], 1 }
 0xea7   :  { %2396 = vsyncpa [#allocation6], 1 }
 0xea8   :  { %2398 = vsyncpa [#allocation6 + $0x1], 1 }

</bundles_post_ra>
